<compile_context>
chip_gen: v5e
topology: v5e:2x2
jax: 0.10.0
libtpu: 0.0.40
codegen_flags: <defaults>
</compile_context>

<pallas_src>
import math
import functools

import jax
import jax.numpy as jnp
from jax.experimental import pallas as pl
from jax.experimental.pallas import tpu as pltpu


# ----------------------------- in-kernel helpers -----------------------------

def _layer_norm(x, gamma, beta, eps=1e-5):
    # PyTorch LayerNorm: biased variance, eps inside the sqrt.
    mu = jnp.mean(x, axis=-1, keepdims=True)
    var = jnp.mean((x - mu) ** 2, axis=-1, keepdims=True)
    return (x - mu) * jax.lax.rsqrt(var + eps) * gamma + beta


# --------------------------------- kernel ------------------------------------

def decoder_kernel(trg_ref, mem_ref,
                   wqkv1_ref, bqkv1_ref, g1_ref, be1_ref,
                   wq2_ref, bq2_ref, wkv2_ref, bkv2_ref, g2_ref, be2_ref,
                   wf1_ref, bf1_ref, wf2_ref, bf2_ref, g3_ref, be3_ref,
                   out_ref, *, B, S, M, D, head, compute_dtype):
    """One decoder layer over a block of B batch elements.

    trg_ref : (B*S, D) bf16     mem_ref : (B*M, D) bf16
    out_ref : (B*S, D) f32      (natural layout: unmasked vst when D % 128 == 0)
    """
    dk = D // head
    cdt = compute_dtype
    f32 = jnp.float32

    trg = trg_ref[...]                  # (B*S, D) bf16
    mem = mem_ref[...]                  # (B*M, D) bf16

    # Additive causal mask, built once; broadcast over the (head*B) group dim.
    # TODO(synk): for long sequences build this per kv-tile inside a flash loop.
    row = jax.lax.broadcasted_iota(jnp.int32, (S, S), 0)
    col = jax.lax.broadcasted_iota(jnp.int32, (S, S), 1)
    causal_add = jnp.where(col > row, f32(-1e30), f32(0.0))

    def split_heads(t2d, seq):
        # (B*seq, head*dk) -> (head*B, seq, dk); group index g = h*B + b.
        # Lane slices + sublane split only.  NOTE: for dk < 128 each head slice
        # pads to a full 128-lane vreg; prefer dk >= 128 in real configs.
        pieces = [t2d[:, h * dk:(h + 1) * dk].reshape(B, seq, dk)
                  for h in range(head)]
        return jnp.concatenate(pieces, axis=0)

    def merge_heads(t3d, seq):
        # (head*B, seq, dk) -> (B*seq, head*dk)  (== torch.cat over heads, dim=-1)
        t4d = t3d.reshape(head, B, seq, dk)
        o = jnp.concatenate([t4d[h] for h in range(head)], axis=-1)   # (B, seq, D)
        return o.reshape(B * seq, D)

    def attention(q2d, k2d, v2d, kv_seq, mask_add):
        # q2d: (B*S, D); k2d/v2d: (B*kv_seq, D).  1/sqrt(dk) is already folded
        # into the q projection.  Two batched matmuls total (no per-head loop).
        # TODO(synk): convert to an online-softmax (flash) loop over kv tiles
        # when S/M grow beyond a few hundred (scores VMEM scales as G*S*kv*4B).
        qg = split_heads(q2d.astype(cdt), S)                 # (G, S, dk)
        kg = split_heads(k2d.astype(cdt), kv_seq)            # (G, kv, dk)
        vg = split_heads(v2d.astype(cdt), kv_seq)            # (G, kv, dk)
        s = jnp.einsum('gqd,gkd->gqk', qg, kg,
                       preferred_element_type=f32)           # (G, S, kv) f32
        if mask_add is not None:
            s = s + mask_add                                 # bcast over G
        m = jnp.max(s, axis=-1, keepdims=True)
        e = jnp.exp(s - m)
        l = jnp.sum(e, axis=-1, keepdims=True)               # (G, S, 1)
        o_un = jnp.einsum('gqk,gkd->gqd', e.astype(cdt), vg,
                          preferred_element_type=f32)        # (G, S, dk)
        # Normalize AFTER the PV matmul: scale the (G,S,dk) output instead of
        # the (G,S,kv) scores -> kv/dk fewer multiplies on the largest tensor.
        o = o_un * pl.reciprocal(l, approx=True)
        return merge_heads(o, S)                             # (B*S, D) f32

    trg_f32 = trg.astype(f32)

    # ---- mha1: masked self-attention, fused QKV projection (one matmul) ----
    qkv1 = jnp.dot(trg, wqkv1_ref[...],
                   preferred_element_type=f32) + bqkv1_ref[...]       # (B*S, 3D)
    a1 = attention(qkv1[:, :D], qkv1[:, D:2 * D], qkv1[:, 2 * D:], S, causal_add)
    x = _layer_norm(trg_f32 + a1, g1_ref[...], be1_ref[...])

    # ---- mha2: cross-attention with memory, fused KV projection ----
    q2 = jnp.dot(x.astype(cdt), wq2_ref[...],
                 preferred_element_type=f32) + bq2_ref[...]
    kv2 = jnp.dot(mem, wkv2_ref[...],
                  preferred_element_type=f32) + bkv2_ref[...]          # (B*M, 2D)
    a2 = attention(q2, kv2[:, :D], kv2[:, D:], M, None)
    x = _layer_norm(x + a2, g2_ref[...], be2_ref[...])

    # ---- feed-forward (dropout == identity in eval mode) ----
    h = jnp.maximum(jnp.dot(x.astype(cdt), wf1_ref[...],
                            preferred_element_type=f32) + bf1_ref[...], 0.0)
    y = jnp.dot(h.astype(cdt), wf2_ref[...],
                preferred_element_type=f32) + bf2_ref[...]
    out = _layer_norm(x + y, g3_ref[...], be3_ref[...])               # (B*S, D) f32

    # ---- direct store in natural layout: single full-block vst ----
    out_ref[...] = out.astype(out_ref.dtype)


# --------------------------------- wrapper -----------------------------------

def prepare_decoder_weights(params, head, compute_dtype=jnp.bfloat16):
    """One-time weight prep (hoisted out of the per-call path):
    fuse QKV / KV projections, fold 1/sqrt(dk) into the q projection
    (weight AND bias), cast matmul weights to the compute dtype.
    `params` is the flat PyTorch-ordered list, weights stored (in, out)."""
    (wq1, bq1, wk1, bk1, wv1, bv1, g1, be1,
     wq2, bq2, wk2, bk2, wv2, bv2, g2, be2,
     wf1, bf1, wf2, bf2, g3, be3) = params
    D = wq1.shape[0]
    scale = 1.0 / math.sqrt(D // head)
    cdt = compute_dtype
    wqkv1 = jnp.concatenate([wq1 * scale, wk1, wv1], axis=1).astype(cdt)   # (D, 3D)
    bqkv1 = jnp.concatenate([bq1 * scale, bk1, bv1], axis=1)               # (1, 3D) f32
    wq2c = (wq2 * scale).astype(cdt)
    bq2c = bq2 * scale
    wkv2 = jnp.concatenate([wk2, wv2], axis=1).astype(cdt)                 # (D, 2D)
    bkv2 = jnp.concatenate([bk2, bv2], axis=1)                             # (1, 2D) f32
    return (wqkv1, bqkv1, g1, be1,
            wq2c, bq2c, wkv2, bkv2, g2, be2,
            wf1.astype(cdt), bf1, wf2.astype(cdt), bf2, g3, be3)


def _pick_batch_block(B, S, M):
    """Pick the per-step batch block: several pipelined grid steps (DMA/compute
    overlap; on v7x the 'parallel' axis is also sharded across both TCs), while
    keeping the per-step matmul M dim (bb*S) MXU-friendly when possible."""
    steps_cands = [d for d in range(2, min(B, 8) + 1) if B % d == 0]
    valid = []
    for steps in sorted(steps_cands, reverse=True):     # most steps first
        bb = B // steps
        if (bb * S) % 8 == 0 and (bb * M) % 8 == 0:     # sublane-aligned blocks
            valid.append(bb)
    if not valid:
        return B                                        # single step fallback
    for bb in valid:                                    # most steps that still
        if bb * S >= 128:                               # give >=128 matmul rows
            return bb
    return valid[0]                                     # else: just most steps


def _estimate_vmem_limit(bb, S, M, D, F, head, weights):
    """Explicit scoped-VMEM limit from the actual per-step buffers."""
    f32, b16 = 4, 2
    w_bytes = sum(int(w.size) * w.dtype.itemsize for w in weights)
    # double-buffered activation blocks (bf16 in, f32 out)
    act = 2 * ((bb * S * D + bb * M * D) * b16 + bb * S * D * f32)
    G = head * bb
    inter = f32 * (bb * S * 3 * D            # fused QKV projection
                   + G * S * S + G * S * M   # self / cross attention scores
                   + bb * S * F              # FF hidden
                   + 8 * bb * S * D)         # residuals / head-split temps
    est = 2 * w_bytes + act + 2 * inter      # weights double-buffered; 2x headroom on temps
    cap = 100 * 1024 * 1024                  # fine for v5e/v6e (128 MiB physical)
    try:                                     # adapt down on v7x (64 MiB physical)
        info = pltpu.get_tpu_info()
        cap = min(cap, int(info.vmem_capacity_bytes * 3 // 4))
    except Exception:
        pass
    return int(min(max(est, 32 * 1024 * 1024), cap))


def decoder_layer_pallas(trg, memory, prepared, head, *,
                         compute_dtype=jnp.bfloat16, batch_block=None,
                         vmem_limit_bytes=None):
    """trg: (B, S, D) f32, memory: (B, M, D) f32,
    prepared: output of prepare_decoder_weights(params, head)."""
    B, S, D = trg.shape
    _, M, _ = memory.shape
    assert D % head == 0
    F = prepared[10].shape[1]                  # wf1 is (D, F)

    bb = _pick_batch_block(B, S, M) if batch_block is None else batch_block
    assert B % bb == 0, "batch_block must divide batch"
    if bb != B:
        assert (bb * S) % 8 == 0 and (bb * M) % 8 == 0, \
            "per-step activation blocks must be sublane (8) aligned"
    grid = (B // bb,)
    cdt = compute_dtype

    # Carry activations through HBM as bf16 (halves activation DMA bytes);
    # layernorm / softmax math stays f32 inside the kernel.
    trg2 = trg.reshape(B * S, D).astype(cdt)
    mem2 = memory.reshape(B * M, D).astype(cdt)

    weights = list(prepared)

    def _const_spec(p):
        nd = p.ndim
        # Constant index_map: weights stay VMEM-resident across grid steps and
        # are not re-DMA'd while trg/mem/out blocks are pipelined.
        return pl.BlockSpec(p.shape, lambda i, _nd=nd: (0,) * _nd)

    in_specs = ([pl.BlockSpec((bb * S, D), lambda i: (i, 0)),
                 pl.BlockSpec((bb * M, D), lambda i: (i, 0))]
                + [_const_spec(p) for p in weights])
    out_spec = pl.BlockSpec((bb * S, D), lambda i: (i, 0))

    if vmem_limit_bytes is None:
        vmem_limit_bytes = _estimate_vmem_limit(bb, S, M, D, F, head, weights)

    out = pl.pallas_call(
        functools.partial(decoder_kernel, B=bb, S=S, M=M, D=D, head=head,
                          compute_dtype=cdt),
        out_shape=jax.ShapeDtypeStruct((B * S, D), jnp.float32),
        grid_spec=pltpu.PrefetchScalarGridSpec(
            num_scalar_prefetch=0,
            grid=grid,
            in_specs=in_specs,
            out_specs=out_spec),
        compiler_params=pltpu.CompilerParams(
            dimension_semantics=("parallel",),
            vmem_limit_bytes=vmem_limit_bytes),
    )(trg2, mem2, *weights)
    return out.reshape(B, S, D)


# ------------------------------ reference (JAX) -------------------------------

def _ref_mha(q_in, k_in, v_in, wq, bq, wk, bk, wv, bv, gamma, beta, head, causal):
    B, S, D = q_in.shape
    M = k_in.shape[1]
    dk = D // head
    q = q_in @ wq + bq
    k = k_in @ wk + bk
    v = v_in @ wv + bv
    q = q.reshape(B, S, head, dk).transpose(0, 2, 1, 3)
    k = k.reshape(B, M, head, dk).transpose(0, 2, 1, 3)
    v = v.reshape(B, M, head, dk).transpose(0, 2, 1, 3)
    s = jnp.einsum("bhqd,bhkd->bhqk", q, k) / math.sqrt(dk)
    if causal:
        rr = jnp.arange(S)[:, None]
        cc = jnp.arange(M)[None, :]
        s = jnp.where(cc > rr, -1e30, s)
    p = jax.nn.softmax(s, axis=-1)
    o = jnp.einsum("bhqk,bhkd->bhqd", p, v)
    o = o.transpose(0, 2, 1, 3).reshape(B, S, D)
    return _layer_norm(q_in + o, gamma, beta)


def decoder_layer_ref(trg, memory, params, head):
    (wq1, bq1, wk1, bk1, wv1, bv1, g1, be1,
     wq2, bq2, wk2, bk2, wv2, bv2, g2, be2,
     wf1, bf1, wf2, bf2, g3, be3) = params
    x = _ref_mha(trg, trg, trg, wq1, bq1, wk1, bk1, wv1, bv1, g1, be1, head, True)
    x = _ref_mha(x, memory, memory, wq2, bq2, wk2, bk2, wv2, bv2, g2, be2, head, False)
    h = jnp.maximum(x @ wf1 + bf1, 0.0)
    y = h @ wf2 + bf2
    return _layer_norm(x + y, g3, be3)


# ---------------------------------- main --------------------------------------

if __name__ == "__main__":
    B, S, M, D, H, F = 2, 8, 8, 32, 4, 64

    keys = jax.random.split(jax.random.PRNGKey(0), 18)

    def u(k, shape, scl=0.1):
        return jax.random.uniform(k, shape, jnp.float32, -scl, scl)

    # weights as (in, out); LayerNorm gamma=1, beta=0 (PyTorch defaults)
    params = [
        # mha1
        u(keys[0], (D, D)), u(keys[1], (1, D)),
        u(keys[2], (D, D)), u(keys[3], (1, D)),
        u(keys[4], (D, D)), u(keys[5], (1, D)),
        jnp.ones((1, D), jnp.float32), jnp.zeros((1, D), jnp.float32),
        # mha2
        u(keys[6], (D, D)), u(keys[7], (1, D)),
        u(keys[8], (D, D)), u(keys[9], (1, D)),
        u(keys[10], (D, D)), u(keys[11], (1, D)),
        jnp.ones((1, D), jnp.float32), jnp.zeros((1, D), jnp.float32),
        # feedforward
        u(keys[12], (D, F)), u(keys[13], (1, F)),
        u(keys[14], (F, D)), u(keys[15], (1, D)),
        jnp.ones((1, D), jnp.float32), jnp.zeros((1, D), jnp.float32),
    ]

    trg = jax.random.normal(keys[16], (B, S, D), jnp.float32)
    memory = jax.random.normal(keys[17], (B, M, D), jnp.float32)

    prepared = prepare_decoder_weights(params, H)          # one-time weight prep
    out = decoder_layer_pallas(trg, memory, prepared, H)
    out = jax.block_until_ready(out)

    ref = decoder_layer_ref(trg, memory, params, H)
    assert out.shape == (B, S, D)
    err = float(jnp.max(jnp.abs(out - ref)))
    # bf16 HBM activations + bf16 MXU inputs (f32 accumulation) + approx softmax
    # reciprocal vs an all-f32 reference => loose tolerance; outputs are
    # layernormed (O(1)).
    assert err < 5e-2, f"max abs err {err}"
    print("KERNEL_OK")
</pallas_src>

<mosaic_0001>
module attributes {stable_mosaic.version = 11 : i64} {
  func.func @decoder_kernel(%arg0: i32, %arg1: memref<8x32xbf16, #tpu.memory_space<vmem>>, %arg2: memref<8x32xbf16, #tpu.memory_space<vmem>>, %arg3: memref<32x96xbf16, #tpu.memory_space<vmem>>, %arg4: memref<1x96xf32, #tpu.memory_space<vmem>>, %arg5: memref<1x32xf32, #tpu.memory_space<vmem>>, %arg6: memref<1x32xf32, #tpu.memory_space<vmem>>, %arg7: memref<32x32xbf16, #tpu.memory_space<vmem>>, %arg8: memref<1x32xf32, #tpu.memory_space<vmem>>, %arg9: memref<32x64xbf16, #tpu.memory_space<vmem>>, %arg10: memref<1x64xf32, #tpu.memory_space<vmem>>, %arg11: memref<1x32xf32, #tpu.memory_space<vmem>>, %arg12: memref<1x32xf32, #tpu.memory_space<vmem>>, %arg13: memref<32x64xbf16, #tpu.memory_space<vmem>>, %arg14: memref<1x64xf32, #tpu.memory_space<vmem>>, %arg15: memref<64x32xbf16, #tpu.memory_space<vmem>>, %arg16: memref<1x32xf32, #tpu.memory_space<vmem>>, %arg17: memref<1x32xf32, #tpu.memory_space<vmem>>, %arg18: memref<1x32xf32, #tpu.memory_space<vmem>>, %arg19: memref<8x32xf32, #tpu.memory_space<vmem>>) attributes {dimension_semantics = [#tpu.dimension_semantics<parallel>], iteration_bounds = array<i64: 2>, scalar_prefetch = 0 : i64, scratch_operands = 0 : i64, tpu.core_type = #tpu.core_type<tc>, window_params = [{transform_indices = @transform_0, window_bounds = array<i64: 8, 32>}, {transform_indices = @transform_1, window_bounds = array<i64: 8, 32>}, {pipeline_mode = #tpu.pipeline_mode<synchronous>, transform_indices = @transform_2, window_bounds = array<i64: 32, 96>}, {pipeline_mode = #tpu.pipeline_mode<synchronous>, transform_indices = @transform_3, window_bounds = array<i64: 1, 96>}, {pipeline_mode = #tpu.pipeline_mode<synchronous>, transform_indices = @transform_4, window_bounds = array<i64: 1, 32>}, {pipeline_mode = #tpu.pipeline_mode<synchronous>, transform_indices = @transform_5, window_bounds = array<i64: 1, 32>}, {pipeline_mode = #tpu.pipeline_mode<synchronous>, transform_indices = @transform_6, window_bounds = array<i64: 32, 32>}, {pipeline_mode = #tpu.pipeline_mode<synchronous>, transform_indices = @transform_7, window_bounds = array<i64: 1, 32>}, {pipeline_mode = #tpu.pipeline_mode<synchronous>, transform_indices = @transform_8, window_bounds = array<i64: 32, 64>}, {pipeline_mode = #tpu.pipeline_mode<synchronous>, transform_indices = @transform_9, window_bounds = array<i64: 1, 64>}, {pipeline_mode = #tpu.pipeline_mode<synchronous>, transform_indices = @transform_10, window_bounds = array<i64: 1, 32>}, {pipeline_mode = #tpu.pipeline_mode<synchronous>, transform_indices = @transform_11, window_bounds = array<i64: 1, 32>}, {pipeline_mode = #tpu.pipeline_mode<synchronous>, transform_indices = @transform_12, window_bounds = array<i64: 32, 64>}, {pipeline_mode = #tpu.pipeline_mode<synchronous>, transform_indices = @transform_13, window_bounds = array<i64: 1, 64>}, {pipeline_mode = #tpu.pipeline_mode<synchronous>, transform_indices = @transform_14, window_bounds = array<i64: 64, 32>}, {pipeline_mode = #tpu.pipeline_mode<synchronous>, transform_indices = @transform_15, window_bounds = array<i64: 1, 32>}, {pipeline_mode = #tpu.pipeline_mode<synchronous>, transform_indices = @transform_16, window_bounds = array<i64: 1, 32>}, {pipeline_mode = #tpu.pipeline_mode<synchronous>, transform_indices = @transform_17, window_bounds = array<i64: 1, 32>}, {transform_indices = @transform_18, window_bounds = array<i64: 8, 32>}]} {
    %c0 = arith.constant 0 : index
    %c0_0 = arith.constant 0 : index
    %0 = vector.load %arg1[%c0, %c0_0] : memref<8x32xbf16, #tpu.memory_space<vmem>>, vector<8x32xbf16>
    %c0_1 = arith.constant 0 : index
    %c0_2 = arith.constant 0 : index
    %1 = vector.load %arg2[%c0_1, %c0_2] : memref<8x32xbf16, #tpu.memory_space<vmem>>, vector<8x32xbf16>
    %2 = tpu.iota {dimensions = array<i32: 0>} : vector<8x8xi32>
    %3 = tpu.iota {dimensions = array<i32: 1>} : vector<8x8xi32>
    %4 = arith.cmpi sgt, %3, %2 : vector<8x8xi32>
    %cst = arith.constant -1.000000e+30 : f32
    %cst_3 = arith.constant 0.000000e+00 : f32
    %5 = vector.broadcast %cst : f32 to vector<8x8xf32>
    %6 = vector.broadcast %cst_3 : f32 to vector<8x8xf32>
    %7 = arith.select %4, %5, %6 : vector<8x8xi1>, vector<8x8xf32>
    %8 = arith.extf %0 : vector<8x32xbf16> to vector<8x32xf32>
    %c0_4 = arith.constant 0 : index
    %c0_5 = arith.constant 0 : index
    %9 = vector.load %arg3[%c0_4, %c0_5] : memref<32x96xbf16, #tpu.memory_space<vmem>>, vector<32x96xbf16>
    %cst_6 = arith.constant dense<0.000000e+00> : vector<8x96xf32>
    %10 = tpu.matmul %0, %9, %cst_6 {dimension_numbers = #tpu.dot_dimension_numbers<[1], [0], [0], [1], [0, 0, 1, 1], [], []>} : vector<8x32xbf16>, vector<32x96xbf16>, vector<8x96xf32> -> vector<8x96xf32>
    %c0_7 = arith.constant 0 : index
    %c0_8 = arith.constant 0 : index
    %11 = vector.load %arg4[%c0_7, %c0_8] : memref<1x96xf32, #tpu.memory_space<vmem>>, vector<1x96xf32>
    %12 = vector.broadcast %11 : vector<1x96xf32> to vector<8x96xf32>
    %13 = arith.addf %10, %12 : vector<8x96xf32>
    %14 = vector.extract_strided_slice %13 {offsets = [0, 0], sizes = [8, 32], strides = [1, 1]} : vector<8x96xf32> to vector<8x32xf32>
    %15 = vector.extract_strided_slice %13 {offsets = [0, 32], sizes = [8, 32], strides = [1, 1]} : vector<8x96xf32> to vector<8x32xf32>
    %16 = vector.extract_strided_slice %13 {offsets = [0, 64], sizes = [8, 32], strides = [1, 1]} : vector<8x96xf32> to vector<8x32xf32>
    %17 = arith.truncf %14 : vector<8x32xf32> to vector<8x32xbf16>
    %18 = vector.extract_strided_slice %17 {offsets = [0, 0], sizes = [8, 8], strides = [1, 1]} : vector<8x32xbf16> to vector<8x8xbf16>
    %19 = vector.shape_cast %18 : vector<8x8xbf16> to vector<1x8x8xbf16>
    %20 = vector.extract_strided_slice %17 {offsets = [0, 8], sizes = [8, 8], strides = [1, 1]} : vector<8x32xbf16> to vector<8x8xbf16>
    %21 = vector.shape_cast %20 : vector<8x8xbf16> to vector<1x8x8xbf16>
    %22 = vector.extract_strided_slice %17 {offsets = [0, 16], sizes = [8, 8], strides = [1, 1]} : vector<8x32xbf16> to vector<8x8xbf16>
    %23 = vector.shape_cast %22 : vector<8x8xbf16> to vector<1x8x8xbf16>
    %24 = vector.extract_strided_slice %17 {offsets = [0, 24], sizes = [8, 8], strides = [1, 1]} : vector<8x32xbf16> to vector<8x8xbf16>
    %25 = vector.shape_cast %24 : vector<8x8xbf16> to vector<1x8x8xbf16>
    %26 = tpu.concatenate %19, %21, %23, %25 in 0 : vector<1x8x8xbf16>, vector<1x8x8xbf16>, vector<1x8x8xbf16>, vector<1x8x8xbf16> -> vector<4x8x8xbf16>
    %27 = arith.truncf %15 : vector<8x32xf32> to vector<8x32xbf16>
    %28 = vector.extract_strided_slice %27 {offsets = [0, 0], sizes = [8, 8], strides = [1, 1]} : vector<8x32xbf16> to vector<8x8xbf16>
    %29 = vector.shape_cast %28 : vector<8x8xbf16> to vector<1x8x8xbf16>
    %30 = vector.extract_strided_slice %27 {offsets = [0, 8], sizes = [8, 8], strides = [1, 1]} : vector<8x32xbf16> to vector<8x8xbf16>
    %31 = vector.shape_cast %30 : vector<8x8xbf16> to vector<1x8x8xbf16>
    %32 = vector.extract_strided_slice %27 {offsets = [0, 16], sizes = [8, 8], strides = [1, 1]} : vector<8x32xbf16> to vector<8x8xbf16>
    %33 = vector.shape_cast %32 : vector<8x8xbf16> to vector<1x8x8xbf16>
    %34 = vector.extract_strided_slice %27 {offsets = [0, 24], sizes = [8, 8], strides = [1, 1]} : vector<8x32xbf16> to vector<8x8xbf16>
    %35 = vector.shape_cast %34 : vector<8x8xbf16> to vector<1x8x8xbf16>
    %36 = tpu.concatenate %29, %31, %33, %35 in 0 : vector<1x8x8xbf16>, vector<1x8x8xbf16>, vector<1x8x8xbf16>, vector<1x8x8xbf16> -> vector<4x8x8xbf16>
    %37 = arith.truncf %16 : vector<8x32xf32> to vector<8x32xbf16>
    %38 = vector.extract_strided_slice %37 {offsets = [0, 0], sizes = [8, 8], strides = [1, 1]} : vector<8x32xbf16> to vector<8x8xbf16>
    %39 = vector.shape_cast %38 : vector<8x8xbf16> to vector<1x8x8xbf16>
    %40 = vector.extract_strided_slice %37 {offsets = [0, 8], sizes = [8, 8], strides = [1, 1]} : vector<8x32xbf16> to vector<8x8xbf16>
    %41 = vector.shape_cast %40 : vector<8x8xbf16> to vector<1x8x8xbf16>
    %42 = vector.extract_strided_slice %37 {offsets = [0, 16], sizes = [8, 8], strides = [1, 1]} : vector<8x32xbf16> to vector<8x8xbf16>
    %43 = vector.shape_cast %42 : vector<8x8xbf16> to vector<1x8x8xbf16>
    %44 = vector.extract_strided_slice %37 {offsets = [0, 24], sizes = [8, 8], strides = [1, 1]} : vector<8x32xbf16> to vector<8x8xbf16>
    %45 = vector.shape_cast %44 : vector<8x8xbf16> to vector<1x8x8xbf16>
    %46 = tpu.concatenate %39, %41, %43, %45 in 0 : vector<1x8x8xbf16>, vector<1x8x8xbf16>, vector<1x8x8xbf16>, vector<1x8x8xbf16> -> vector<4x8x8xbf16>
    "tpu.trace_start"() <{level = 10 : i32, message = "gqd,gkd->gqk"}> : () -> ()
    %cst_9 = arith.constant dense<0.000000e+00> : vector<4x8x8xf32>
    %47 = tpu.matmul %26, %36, %cst_9 {dimension_numbers = #tpu.dot_dimension_numbers<[2], [2], [1], [1], [0, 0, 0, 1, 1, 1], [0], [0]>} : vector<4x8x8xbf16>, vector<4x8x8xbf16>, vector<4x8x8xf32> -> vector<4x8x8xf32>
    "tpu.trace_stop"() : () -> ()
    %48 = vector.shape_cast %7 : vector<8x8xf32> to vector<1x8x8xf32>
    %49 = vector.broadcast %48 : vector<1x8x8xf32> to vector<4x8x8xf32>
    %50 = arith.addf %47, %49 : vector<4x8x8xf32>
    %cst_10 = arith.constant dense<0xFF800000> : vector<4x8xf32>
    %51 = vector.multi_reduction <maximumf>, %50, %cst_10 [2] : vector<4x8x8xf32> to vector<4x8xf32>
    %52 = vector.shape_cast %51 : vector<4x8xf32> to vector<4x8x1xf32>
    %53 = vector.broadcast %52 : vector<4x8x1xf32> to vector<4x8x8xf32>
    %54 = arith.subf %50, %53 : vector<4x8x8xf32>
    %55 = math.exp %54 : vector<4x8x8xf32>
    %cst_11 = arith.constant dense<0.000000e+00> : vector<4x8xf32>
    %56 = vector.multi_reduction <add>, %55, %cst_11 [2] : vector<4x8x8xf32> to vector<4x8xf32>
    %57 = vector.shape_cast %56 : vector<4x8xf32> to vector<4x8x1xf32>
    %58 = arith.truncf %55 : vector<4x8x8xf32> to vector<4x8x8xbf16>
    "tpu.trace_start"() <{level = 10 : i32, message = "gqk,gkd->gqd"}> : () -> ()
    %cst_12 = arith.constant dense<0.000000e+00> : vector<4x8x8xf32>
    %59 = tpu.matmul %58, %46, %cst_12 {dimension_numbers = #tpu.dot_dimension_numbers<[2], [1], [1], [2], [0, 0, 0, 1, 1, 2], [0], [0]>} : vector<4x8x8xbf16>, vector<4x8x8xbf16>, vector<4x8x8xf32> -> vector<4x8x8xf32>
    "tpu.trace_stop"() : () -> ()
    %60 = tpu.reciprocal %57 {approx = true} : vector<4x8x1xf32> -> vector<4x8x1xf32>
    %61 = vector.broadcast %60 : vector<4x8x1xf32> to vector<4x8x8xf32>
    %62 = arith.mulf %59, %61 : vector<4x8x8xf32>
    %63 = vector.shape_cast %62 : vector<4x8x8xf32> to vector<4x1x8x8xf32>
    %64 = vector.extract_strided_slice %63 {offsets = [0, 0, 0, 0], sizes = [1, 1, 8, 8], strides = [1, 1, 1, 1]} : vector<4x1x8x8xf32> to vector<1x1x8x8xf32>
    %65 = vector.shape_cast %64 : vector<1x1x8x8xf32> to vector<1x8x8xf32>
    %66 = vector.extract_strided_slice %63 {offsets = [1, 0, 0, 0], sizes = [1, 1, 8, 8], strides = [1, 1, 1, 1]} : vector<4x1x8x8xf32> to vector<1x1x8x8xf32>
    %67 = vector.shape_cast %66 : vector<1x1x8x8xf32> to vector<1x8x8xf32>
    %68 = vector.extract_strided_slice %63 {offsets = [2, 0, 0, 0], sizes = [1, 1, 8, 8], strides = [1, 1, 1, 1]} : vector<4x1x8x8xf32> to vector<1x1x8x8xf32>
    %69 = vector.shape_cast %68 : vector<1x1x8x8xf32> to vector<1x8x8xf32>
    %70 = vector.extract_strided_slice %63 {offsets = [3, 0, 0, 0], sizes = [1, 1, 8, 8], strides = [1, 1, 1, 1]} : vector<4x1x8x8xf32> to vector<1x1x8x8xf32>
    %71 = vector.shape_cast %70 : vector<1x1x8x8xf32> to vector<1x8x8xf32>
    %72 = tpu.concatenate %65, %67, %69, %71 in 2 : vector<1x8x8xf32>, vector<1x8x8xf32>, vector<1x8x8xf32>, vector<1x8x8xf32> -> vector<1x8x32xf32>
    %73 = vector.shape_cast %72 : vector<1x8x32xf32> to vector<8x32xf32>
    %74 = arith.addf %8, %73 : vector<8x32xf32>
    %c0_13 = arith.constant 0 : index
    %c0_14 = arith.constant 0 : index
    %75 = vector.load %arg5[%c0_13, %c0_14] : memref<1x32xf32, #tpu.memory_space<vmem>>, vector<1x32xf32>
    %c0_15 = arith.constant 0 : index
    %c0_16 = arith.constant 0 : index
    %76 = vector.load %arg6[%c0_15, %c0_16] : memref<1x32xf32, #tpu.memory_space<vmem>>, vector<1x32xf32>
    %cst_17 = arith.constant dense<0.000000e+00> : vector<8xf32>
    %77 = vector.multi_reduction <add>, %74, %cst_17 [1] : vector<8x32xf32> to vector<8xf32>
    %78 = vector.shape_cast %77 : vector<8xf32> to vector<8x1xf32>
    %cst_18 = arith.constant 3.200000e+01 : f32
    %79 = vector.broadcast %cst_18 : f32 to vector<8x1xf32>
    %80 = arith.divf %78, %79 : vector<8x1xf32>
    %81 = vector.broadcast %80 : vector<8x1xf32> to vector<8x32xf32>
    %82 = arith.subf %74, %81 : vector<8x32xf32>
    %83 = arith.mulf %82, %82 : vector<8x32xf32>
    %cst_19 = arith.constant dense<0.000000e+00> : vector<8xf32>
    %84 = vector.multi_reduction <add>, %83, %cst_19 [1] : vector<8x32xf32> to vector<8xf32>
    %85 = vector.shape_cast %84 : vector<8xf32> to vector<8x1xf32>
    %cst_20 = arith.constant 3.200000e+01 : f32
    %86 = vector.broadcast %cst_20 : f32 to vector<8x1xf32>
    %87 = arith.divf %85, %86 : vector<8x1xf32>
    %88 = vector.broadcast %80 : vector<8x1xf32> to vector<8x32xf32>
    %89 = arith.subf %74, %88 : vector<8x32xf32>
    %cst_21 = arith.constant 9.99999974E-6 : f32
    %90 = vector.broadcast %cst_21 : f32 to vector<8x1xf32>
    %91 = arith.addf %87, %90 : vector<8x1xf32>
    %92 = math.rsqrt %91 : vector<8x1xf32>
    %93 = vector.broadcast %92 : vector<8x1xf32> to vector<8x32xf32>
    %94 = arith.mulf %89, %93 : vector<8x32xf32>
    %95 = vector.broadcast %75 : vector<1x32xf32> to vector<8x32xf32>
    %96 = arith.mulf %94, %95 : vector<8x32xf32>
    %97 = vector.broadcast %76 : vector<1x32xf32> to vector<8x32xf32>
    %98 = arith.addf %96, %97 : vector<8x32xf32>
    %99 = arith.truncf %98 : vector<8x32xf32> to vector<8x32xbf16>
    %c0_22 = arith.constant 0 : index
    %c0_23 = arith.constant 0 : index
    %100 = vector.load %arg7[%c0_22, %c0_23] : memref<32x32xbf16, #tpu.memory_space<vmem>>, vector<32x32xbf16>
    %cst_24 = arith.constant dense<0.000000e+00> : vector<8x32xf32>
    %101 = tpu.matmul %99, %100, %cst_24 {dimension_numbers = #tpu.dot_dimension_numbers<[1], [0], [0], [1], [0, 0, 1, 1], [], []>} : vector<8x32xbf16>, vector<32x32xbf16>, vector<8x32xf32> -> vector<8x32xf32>
    %c0_25 = arith.constant 0 : index
    %c0_26 = arith.constant 0 : index
    %102 = vector.load %arg8[%c0_25, %c0_26] : memref<1x32xf32, #tpu.memory_space<vmem>>, vector<1x32xf32>
    %103 = vector.broadcast %102 : vector<1x32xf32> to vector<8x32xf32>
    %104 = arith.addf %101, %103 : vector<8x32xf32>
    %c0_27 = arith.constant 0 : index
    %c0_28 = arith.constant 0 : index
    %105 = vector.load %arg9[%c0_27, %c0_28] : memref<32x64xbf16, #tpu.memory_space<vmem>>, vector<32x64xbf16>
    %cst_29 = arith.constant dense<0.000000e+00> : vector<8x64xf32>
    %106 = tpu.matmul %1, %105, %cst_29 {dimension_numbers = #tpu.dot_dimension_numbers<[1], [0], [0], [1], [0, 0, 1, 1], [], []>} : vector<8x32xbf16>, vector<32x64xbf16>, vector<8x64xf32> -> vector<8x64xf32>
    %c0_30 = arith.constant 0 : index
    %c0_31 = arith.constant 0 : index
    %107 = vector.load %arg10[%c0_30, %c0_31] : memref<1x64xf32, #tpu.memory_space<vmem>>, vector<1x64xf32>
    %108 = vector.broadcast %107 : vector<1x64xf32> to vector<8x64xf32>
    %109 = arith.addf %106, %108 : vector<8x64xf32>
    %110 = vector.extract_strided_slice %109 {offsets = [0, 0], sizes = [8, 32], strides = [1, 1]} : vector<8x64xf32> to vector<8x32xf32>
    %111 = vector.extract_strided_slice %109 {offsets = [0, 32], sizes = [8, 32], strides = [1, 1]} : vector<8x64xf32> to vector<8x32xf32>
    %112 = arith.truncf %104 : vector<8x32xf32> to vector<8x32xbf16>
    %113 = vector.extract_strided_slice %112 {offsets = [0, 0], sizes = [8, 8], strides = [1, 1]} : vector<8x32xbf16> to vector<8x8xbf16>
    %114 = vector.shape_cast %113 : vector<8x8xbf16> to vector<1x8x8xbf16>
    %115 = vector.extract_strided_slice %112 {offsets = [0, 8], sizes = [8, 8], strides = [1, 1]} : vector<8x32xbf16> to vector<8x8xbf16>
    %116 = vector.shape_cast %115 : vector<8x8xbf16> to vector<1x8x8xbf16>
    %117 = vector.extract_strided_slice %112 {offsets = [0, 16], sizes = [8, 8], strides = [1, 1]} : vector<8x32xbf16> to vector<8x8xbf16>
    %118 = vector.shape_cast %117 : vector<8x8xbf16> to vector<1x8x8xbf16>
    %119 = vector.extract_strided_slice %112 {offsets = [0, 24], sizes = [8, 8], strides = [1, 1]} : vector<8x32xbf16> to vector<8x8xbf16>
    %120 = vector.shape_cast %119 : vector<8x8xbf16> to vector<1x8x8xbf16>
    %121 = tpu.concatenate %114, %116, %118, %120 in 0 : vector<1x8x8xbf16>, vector<1x8x8xbf16>, vector<1x8x8xbf16>, vector<1x8x8xbf16> -> vector<4x8x8xbf16>
    %122 = arith.truncf %110 : vector<8x32xf32> to vector<8x32xbf16>
    %123 = vector.extract_strided_slice %122 {offsets = [0, 0], sizes = [8, 8], strides = [1, 1]} : vector<8x32xbf16> to vector<8x8xbf16>
    %124 = vector.shape_cast %123 : vector<8x8xbf16> to vector<1x8x8xbf16>
    %125 = vector.extract_strided_slice %122 {offsets = [0, 8], sizes = [8, 8], strides = [1, 1]} : vector<8x32xbf16> to vector<8x8xbf16>
    %126 = vector.shape_cast %125 : vector<8x8xbf16> to vector<1x8x8xbf16>
    %127 = vector.extract_strided_slice %122 {offsets = [0, 16], sizes = [8, 8], strides = [1, 1]} : vector<8x32xbf16> to vector<8x8xbf16>
    %128 = vector.shape_cast %127 : vector<8x8xbf16> to vector<1x8x8xbf16>
    %129 = vector.extract_strided_slice %122 {offsets = [0, 24], sizes = [8, 8], strides = [1, 1]} : vector<8x32xbf16> to vector<8x8xbf16>
    %130 = vector.shape_cast %129 : vector<8x8xbf16> to vector<1x8x8xbf16>
    %131 = tpu.concatenate %124, %126, %128, %130 in 0 : vector<1x8x8xbf16>, vector<1x8x8xbf16>, vector<1x8x8xbf16>, vector<1x8x8xbf16> -> vector<4x8x8xbf16>
    %132 = arith.truncf %111 : vector<8x32xf32> to vector<8x32xbf16>
    %133 = vector.extract_strided_slice %132 {offsets = [0, 0], sizes = [8, 8], strides = [1, 1]} : vector<8x32xbf16> to vector<8x8xbf16>
    %134 = vector.shape_cast %133 : vector<8x8xbf16> to vector<1x8x8xbf16>
    %135 = vector.extract_strided_slice %132 {offsets = [0, 8], sizes = [8, 8], strides = [1, 1]} : vector<8x32xbf16> to vector<8x8xbf16>
    %136 = vector.shape_cast %135 : vector<8x8xbf16> to vector<1x8x8xbf16>
    %137 = vector.extract_strided_slice %132 {offsets = [0, 16], sizes = [8, 8], strides = [1, 1]} : vector<8x32xbf16> to vector<8x8xbf16>
    %138 = vector.shape_cast %137 : vector<8x8xbf16> to vector<1x8x8xbf16>
    %139 = vector.extract_strided_slice %132 {offsets = [0, 24], sizes = [8, 8], strides = [1, 1]} : vector<8x32xbf16> to vector<8x8xbf16>
    %140 = vector.shape_cast %139 : vector<8x8xbf16> to vector<1x8x8xbf16>
    %141 = tpu.concatenate %134, %136, %138, %140 in 0 : vector<1x8x8xbf16>, vector<1x8x8xbf16>, vector<1x8x8xbf16>, vector<1x8x8xbf16> -> vector<4x8x8xbf16>
    "tpu.trace_start"() <{level = 10 : i32, message = "gqd,gkd->gqk"}> : () -> ()
    %cst_32 = arith.constant dense<0.000000e+00> : vector<4x8x8xf32>
    %142 = tpu.matmul %121, %131, %cst_32 {dimension_numbers = #tpu.dot_dimension_numbers<[2], [2], [1], [1], [0, 0, 0, 1, 1, 1], [0], [0]>} : vector<4x8x8xbf16>, vector<4x8x8xbf16>, vector<4x8x8xf32> -> vector<4x8x8xf32>
    "tpu.trace_stop"() : () -> ()
    %cst_33 = arith.constant dense<0xFF800000> : vector<4x8xf32>
    %143 = vector.multi_reduction <maximumf>, %142, %cst_33 [2] : vector<4x8x8xf32> to vector<4x8xf32>
    %144 = vector.shape_cast %143 : vector<4x8xf32> to vector<4x8x1xf32>
    %145 = vector.broadcast %144 : vector<4x8x1xf32> to vector<4x8x8xf32>
    %146 = arith.subf %142, %145 : vector<4x8x8xf32>
    %147 = math.exp %146 : vector<4x8x8xf32>
    %cst_34 = arith.constant dense<0.000000e+00> : vector<4x8xf32>
    %148 = vector.multi_reduction <add>, %147, %cst_34 [2] : vector<4x8x8xf32> to vector<4x8xf32>
    %149 = vector.shape_cast %148 : vector<4x8xf32> to vector<4x8x1xf32>
    %150 = arith.truncf %147 : vector<4x8x8xf32> to vector<4x8x8xbf16>
    "tpu.trace_start"() <{level = 10 : i32, message = "gqk,gkd->gqd"}> : () -> ()
    %cst_35 = arith.constant dense<0.000000e+00> : vector<4x8x8xf32>
    %151 = tpu.matmul %150, %141, %cst_35 {dimension_numbers = #tpu.dot_dimension_numbers<[2], [1], [1], [2], [0, 0, 0, 1, 1, 2], [0], [0]>} : vector<4x8x8xbf16>, vector<4x8x8xbf16>, vector<4x8x8xf32> -> vector<4x8x8xf32>
    "tpu.trace_stop"() : () -> ()
    %152 = tpu.reciprocal %149 {approx = true} : vector<4x8x1xf32> -> vector<4x8x1xf32>
    %153 = vector.broadcast %152 : vector<4x8x1xf32> to vector<4x8x8xf32>
    %154 = arith.mulf %151, %153 : vector<4x8x8xf32>
    %155 = vector.shape_cast %154 : vector<4x8x8xf32> to vector<4x1x8x8xf32>
    %156 = vector.extract_strided_slice %155 {offsets = [0, 0, 0, 0], sizes = [1, 1, 8, 8], strides = [1, 1, 1, 1]} : vector<4x1x8x8xf32> to vector<1x1x8x8xf32>
    %157 = vector.shape_cast %156 : vector<1x1x8x8xf32> to vector<1x8x8xf32>
    %158 = vector.extract_strided_slice %155 {offsets = [1, 0, 0, 0], sizes = [1, 1, 8, 8], strides = [1, 1, 1, 1]} : vector<4x1x8x8xf32> to vector<1x1x8x8xf32>
    %159 = vector.shape_cast %158 : vector<1x1x8x8xf32> to vector<1x8x8xf32>
    %160 = vector.extract_strided_slice %155 {offsets = [2, 0, 0, 0], sizes = [1, 1, 8, 8], strides = [1, 1, 1, 1]} : vector<4x1x8x8xf32> to vector<1x1x8x8xf32>
    %161 = vector.shape_cast %160 : vector<1x1x8x8xf32> to vector<1x8x8xf32>
    %162 = vector.extract_strided_slice %155 {offsets = [3, 0, 0, 0], sizes = [1, 1, 8, 8], strides = [1, 1, 1, 1]} : vector<4x1x8x8xf32> to vector<1x1x8x8xf32>
    %163 = vector.shape_cast %162 : vector<1x1x8x8xf32> to vector<1x8x8xf32>
    %164 = tpu.concatenate %157, %159, %161, %163 in 2 : vector<1x8x8xf32>, vector<1x8x8xf32>, vector<1x8x8xf32>, vector<1x8x8xf32> -> vector<1x8x32xf32>
    %165 = vector.shape_cast %164 : vector<1x8x32xf32> to vector<8x32xf32>
    %166 = arith.addf %98, %165 : vector<8x32xf32>
    %c0_36 = arith.constant 0 : index
    %c0_37 = arith.constant 0 : index
    %167 = vector.load %arg11[%c0_36, %c0_37] : memref<1x32xf32, #tpu.memory_space<vmem>>, vector<1x32xf32>
    %c0_38 = arith.constant 0 : index
    %c0_39 = arith.constant 0 : index
    %168 = vector.load %arg12[%c0_38, %c0_39] : memref<1x32xf32, #tpu.memory_space<vmem>>, vector<1x32xf32>
    %cst_40 = arith.constant dense<0.000000e+00> : vector<8xf32>
    %169 = vector.multi_reduction <add>, %166, %cst_40 [1] : vector<8x32xf32> to vector<8xf32>
    %170 = vector.shape_cast %169 : vector<8xf32> to vector<8x1xf32>
    %cst_41 = arith.constant 3.200000e+01 : f32
    %171 = vector.broadcast %cst_41 : f32 to vector<8x1xf32>
    %172 = arith.divf %170, %171 : vector<8x1xf32>
    %173 = vector.broadcast %172 : vector<8x1xf32> to vector<8x32xf32>
    %174 = arith.subf %166, %173 : vector<8x32xf32>
    %175 = arith.mulf %174, %174 : vector<8x32xf32>
    %cst_42 = arith.constant dense<0.000000e+00> : vector<8xf32>
    %176 = vector.multi_reduction <add>, %175, %cst_42 [1] : vector<8x32xf32> to vector<8xf32>
    %177 = vector.shape_cast %176 : vector<8xf32> to vector<8x1xf32>
    %cst_43 = arith.constant 3.200000e+01 : f32
    %178 = vector.broadcast %cst_43 : f32 to vector<8x1xf32>
    %179 = arith.divf %177, %178 : vector<8x1xf32>
    %180 = vector.broadcast %172 : vector<8x1xf32> to vector<8x32xf32>
    %181 = arith.subf %166, %180 : vector<8x32xf32>
    %cst_44 = arith.constant 9.99999974E-6 : f32
    %182 = vector.broadcast %cst_44 : f32 to vector<8x1xf32>
    %183 = arith.addf %179, %182 : vector<8x1xf32>
    %184 = math.rsqrt %183 : vector<8x1xf32>
    %185 = vector.broadcast %184 : vector<8x1xf32> to vector<8x32xf32>
    %186 = arith.mulf %181, %185 : vector<8x32xf32>
    %187 = vector.broadcast %167 : vector<1x32xf32> to vector<8x32xf32>
    %188 = arith.mulf %186, %187 : vector<8x32xf32>
    %189 = vector.broadcast %168 : vector<1x32xf32> to vector<8x32xf32>
    %190 = arith.addf %188, %189 : vector<8x32xf32>
    %191 = arith.truncf %190 : vector<8x32xf32> to vector<8x32xbf16>
    %c0_45 = arith.constant 0 : index
    %c0_46 = arith.constant 0 : index
    %192 = vector.load %arg13[%c0_45, %c0_46] : memref<32x64xbf16, #tpu.memory_space<vmem>>, vector<32x64xbf16>
    %cst_47 = arith.constant dense<0.000000e+00> : vector<8x64xf32>
    %193 = tpu.matmul %191, %192, %cst_47 {dimension_numbers = #tpu.dot_dimension_numbers<[1], [0], [0], [1], [0, 0, 1, 1], [], []>} : vector<8x32xbf16>, vector<32x64xbf16>, vector<8x64xf32> -> vector<8x64xf32>
    %c0_48 = arith.constant 0 : index
    %c0_49 = arith.constant 0 : index
    %194 = vector.load %arg14[%c0_48, %c0_49] : memref<1x64xf32, #tpu.memory_space<vmem>>, vector<1x64xf32>
    %195 = vector.broadcast %194 : vector<1x64xf32> to vector<8x64xf32>
    %196 = arith.addf %193, %195 : vector<8x64xf32>
    %cst_50 = arith.constant 0.000000e+00 : f32
    %197 = vector.broadcast %cst_50 : f32 to vector<8x64xf32>
    %198 = arith.maximumf %196, %197 : vector<8x64xf32>
    %199 = arith.truncf %198 : vector<8x64xf32> to vector<8x64xbf16>
    %c0_51 = arith.constant 0 : index
    %c0_52 = arith.constant 0 : index
    %200 = vector.load %arg15[%c0_51, %c0_52] : memref<64x32xbf16, #tpu.memory_space<vmem>>, vector<64x32xbf16>
    %cst_53 = arith.constant dense<0.000000e+00> : vector<8x32xf32>
    %201 = tpu.matmul %199, %200, %cst_53 {dimension_numbers = #tpu.dot_dimension_numbers<[1], [0], [0], [1], [0, 0, 1, 1], [], []>} : vector<8x64xbf16>, vector<64x32xbf16>, vector<8x32xf32> -> vector<8x32xf32>
    %c0_54 = arith.constant 0 : index
    %c0_55 = arith.constant 0 : index
    %202 = vector.load %arg16[%c0_54, %c0_55] : memref<1x32xf32, #tpu.memory_space<vmem>>, vector<1x32xf32>
    %203 = vector.broadcast %202 : vector<1x32xf32> to vector<8x32xf32>
    %204 = arith.addf %201, %203 : vector<8x32xf32>
    %205 = arith.addf %190, %204 : vector<8x32xf32>
    %c0_56 = arith.constant 0 : index
    %c0_57 = arith.constant 0 : index
    %206 = vector.load %arg17[%c0_56, %c0_57] : memref<1x32xf32, #tpu.memory_space<vmem>>, vector<1x32xf32>
    %c0_58 = arith.constant 0 : index
    %c0_59 = arith.constant 0 : index
    %207 = vector.load %arg18[%c0_58, %c0_59] : memref<1x32xf32, #tpu.memory_space<vmem>>, vector<1x32xf32>
    %cst_60 = arith.constant dense<0.000000e+00> : vector<8xf32>
    %208 = vector.multi_reduction <add>, %205, %cst_60 [1] : vector<8x32xf32> to vector<8xf32>
    %209 = vector.shape_cast %208 : vector<8xf32> to vector<8x1xf32>
    %cst_61 = arith.constant 3.200000e+01 : f32
    %210 = vector.broadcast %cst_61 : f32 to vector<8x1xf32>
    %211 = arith.divf %209, %210 : vector<8x1xf32>
    %212 = vector.broadcast %211 : vector<8x1xf32> to vector<8x32xf32>
    %213 = arith.subf %205, %212 : vector<8x32xf32>
    %214 = arith.mulf %213, %213 : vector<8x32xf32>
    %cst_62 = arith.constant dense<0.000000e+00> : vector<8xf32>
    %215 = vector.multi_reduction <add>, %214, %cst_62 [1] : vector<8x32xf32> to vector<8xf32>
    %216 = vector.shape_cast %215 : vector<8xf32> to vector<8x1xf32>
    %cst_63 = arith.constant 3.200000e+01 : f32
    %217 = vector.broadcast %cst_63 : f32 to vector<8x1xf32>
    %218 = arith.divf %216, %217 : vector<8x1xf32>
    %219 = vector.broadcast %211 : vector<8x1xf32> to vector<8x32xf32>
    %220 = arith.subf %205, %219 : vector<8x32xf32>
    %cst_64 = arith.constant 9.99999974E-6 : f32
    %221 = vector.broadcast %cst_64 : f32 to vector<8x1xf32>
    %222 = arith.addf %218, %221 : vector<8x1xf32>
    %223 = math.rsqrt %222 : vector<8x1xf32>
    %224 = vector.broadcast %223 : vector<8x1xf32> to vector<8x32xf32>
    %225 = arith.mulf %220, %224 : vector<8x32xf32>
    %226 = vector.broadcast %206 : vector<1x32xf32> to vector<8x32xf32>
    %227 = arith.mulf %225, %226 : vector<8x32xf32>
    %228 = vector.broadcast %207 : vector<1x32xf32> to vector<8x32xf32>
    %229 = arith.addf %227, %228 : vector<8x32xf32>
    %c0_65 = arith.constant 0 : index
    %c0_66 = arith.constant 0 : index
    %230 = vector.load %arg19[%c0_65, %c0_66] : memref<8x32xf32, #tpu.memory_space<vmem>>, vector<8x32xf32>
    tpu.vector_store %arg19[%c0_65, %c0_66], %229 {strides = array<i32>} : memref<8x32xf32, #tpu.memory_space<vmem>>, vector<8x32xf32>,
    return
  }
  func.func @transform_0(%arg0: i32) -> (i32, i32) {
    %c0_i32 = arith.constant 0 : i32
    %c0_i32_0 = arith.constant 0 : i32
    return %arg0, %c0_i32 : i32, i32
  }
  func.func @transform_1(%arg0: i32) -> (i32, i32) {
    %c0_i32 = arith.constant 0 : i32
    %c0_i32_0 = arith.constant 0 : i32
    return %arg0, %c0_i32 : i32, i32
  }
  func.func @transform_2(%arg0: i32) -> (i32, i32) {
    %c0_i32 = arith.constant 0 : i32
    %c0_i32_0 = arith.constant 0 : i32
    %c0_i32_1 = arith.constant 0 : i32
    return %c0_i32, %c0_i32_0 : i32, i32
  }
  func.func @transform_3(%arg0: i32) -> (i32, i32) {
    %c0_i32 = arith.constant 0 : i32
    %c0_i32_0 = arith.constant 0 : i32
    %c0_i32_1 = arith.constant 0 : i32
    return %c0_i32, %c0_i32_0 : i32, i32
  }
  func.func @transform_4(%arg0: i32) -> (i32, i32) {
    %c0_i32 = arith.constant 0 : i32
    %c0_i32_0 = arith.constant 0 : i32
    %c0_i32_1 = arith.constant 0 : i32
    return %c0_i32, %c0_i32_0 : i32, i32
  }
  func.func @transform_5(%arg0: i32) -> (i32, i32) {
    %c0_i32 = arith.constant 0 : i32
    %c0_i32_0 = arith.constant 0 : i32
    %c0_i32_1 = arith.constant 0 : i32
    return %c0_i32, %c0_i32_0 : i32, i32
  }
  func.func @transform_6(%arg0: i32) -> (i32, i32) {
    %c0_i32 = arith.constant 0 : i32
    %c0_i32_0 = arith.constant 0 : i32
    %c0_i32_1 = arith.constant 0 : i32
    return %c0_i32, %c0_i32_0 : i32, i32
  }
  func.func @transform_7(%arg0: i32) -> (i32, i32) {
    %c0_i32 = arith.constant 0 : i32
    %c0_i32_0 = arith.constant 0 : i32
    %c0_i32_1 = arith.constant 0 : i32
    return %c0_i32, %c0_i32_0 : i32, i32
  }
  func.func @transform_8(%arg0: i32) -> (i32, i32) {
    %c0_i32 = arith.constant 0 : i32
    %c0_i32_0 = arith.constant 0 : i32
    %c0_i32_1 = arith.constant 0 : i32
    return %c0_i32, %c0_i32_0 : i32, i32
  }
  func.func @transform_9(%arg0: i32) -> (i32, i32) {
    %c0_i32 = arith.constant 0 : i32
    %c0_i32_0 = arith.constant 0 : i32
    %c0_i32_1 = arith.constant 0 : i32
    return %c0_i32, %c0_i32_0 : i32, i32
  }
  func.func @transform_10(%arg0: i32) -> (i32, i32) {
    %c0_i32 = arith.constant 0 : i32
    %c0_i32_0 = arith.constant 0 : i32
    %c0_i32_1 = arith.constant 0 : i32
    return %c0_i32, %c0_i32_0 : i32, i32
  }
  func.func @transform_11(%arg0: i32) -> (i32, i32) {
    %c0_i32 = arith.constant 0 : i32
    %c0_i32_0 = arith.constant 0 : i32
    %c0_i32_1 = arith.constant 0 : i32
    return %c0_i32, %c0_i32_0 : i32, i32
  }
  func.func @transform_12(%arg0: i32) -> (i32, i32) {
    %c0_i32 = arith.constant 0 : i32
    %c0_i32_0 = arith.constant 0 : i32
    %c0_i32_1 = arith.constant 0 : i32
    return %c0_i32, %c0_i32_0 : i32, i32
  }
  func.func @transform_13(%arg0: i32) -> (i32, i32) {
    %c0_i32 = arith.constant 0 : i32
    %c0_i32_0 = arith.constant 0 : i32
    %c0_i32_1 = arith.constant 0 : i32
    return %c0_i32, %c0_i32_0 : i32, i32
  }
  func.func @transform_14(%arg0: i32) -> (i32, i32) {
    %c0_i32 = arith.constant 0 : i32
    %c0_i32_0 = arith.constant 0 : i32
    %c0_i32_1 = arith.constant 0 : i32
    return %c0_i32, %c0_i32_0 : i32, i32
  }
  func.func @transform_15(%arg0: i32) -> (i32, i32) {
    %c0_i32 = arith.constant 0 : i32
    %c0_i32_0 = arith.constant 0 : i32
    %c0_i32_1 = arith.constant 0 : i32
    return %c0_i32, %c0_i32_0 : i32, i32
  }
  func.func @transform_16(%arg0: i32) -> (i32, i32) {
    %c0_i32 = arith.constant 0 : i32
    %c0_i32_0 = arith.constant 0 : i32
    %c0_i32_1 = arith.constant 0 : i32
    return %c0_i32, %c0_i32_0 : i32, i32
  }
  func.func @transform_17(%arg0: i32) -> (i32, i32) {
    %c0_i32 = arith.constant 0 : i32
    %c0_i32_0 = arith.constant 0 : i32
    %c0_i32_1 = arith.constant 0 : i32
    return %c0_i32, %c0_i32_0 : i32, i32
  }
  func.func @transform_18(%arg0: i32) -> (i32, i32) {
    %c0_i32 = arith.constant 0 : i32
    %c0_i32_0 = arith.constant 0 : i32
    return %arg0, %c0_i32 : i32, i32
  }
}

</mosaic_0001>

<bundles_post_ra>
// kernel: tpu_custom_call.1
= control target key start
LH: loop header
LB: loop body
LE: loop exit
PB: predicated region body
PF: predicated region fallthrough
CT: control target
= control target key end

     0   :  { %s2417_s0 = inlined_call_operand.hbm [shape: bf16[16,32], index: 0, kind: input, shape index: {}]   ;;  %s2418_s1 = inlined_call_operand.hbm [shape: bf16[16,32], index: 1, kind: input, shape index: {}]   ;;  %s2419_s2 = inlined_call_operand.vmem [shape: bf16[32,96], index: 2, kind: input, shape index: {}]   ;;  %s2420_s3 = inlined_call_operand.vmem [shape: f32[1,96], index: 3, kind: input, shape index: {}]   ;;  %s2421_s4 = inlined_call_operand.vmem [shape: f32[1,32], index: 4, kind: input, shape index: {}]   ;;  %s2422_s5 = inlined_call_operand.vmem [shape: f32[1,32], index: 5, kind: input, shape index: {}]   ;;  %s2423_s6 = inlined_call_operand.vmem [shape: bf16[32,32], index: 6, kind: input, shape index: {}]   ;;  %s2424_s7 = inlined_call_operand.vmem [shape: f32[1,32], index: 7, kind: input, shape index: {}]   ;;  %s2425_s8 = inlined_call_operand.vmem [shape: bf16[32,64], index: 8, kind: input, shape index: {}]   ;;  %s2426_s9 = inlined_call_operand.vmem [shape: f32[1,64], index: 9, kind: input, shape index: {}]   ;;  %s2427_s10 = inlined_call_operand.vmem [shape: f32[1,32], index: 10, kind: input, shape index: {}]   ;;  %s2428_s11 = inlined_call_operand.vmem [shape: f32[1,32], index: 11, kind: input, shape index: {}]   ;;  %s2429_s12 = inlined_call_operand.hbm [shape: bf16[32,64], index: 12, kind: input, shape index: {}]   ;;  %s2430_s13 = inlined_call_operand.vmem [shape: f32[1,64], index: 13, kind: input, shape index: {}]   ;;  %s2431_s14 = inlined_call_operand.vmem [shape: bf16[64,32], index: 14, kind: input, shape index: {}]   ;;  %s2432_s15 = inlined_call_operand.vmem [shape: f32[1,32], index: 15, kind: input, shape index: {}]   ;;  %s2433_s16 = inlined_call_operand.vmem [shape: f32[1,32], index: 16, kind: input, shape index: {}]   ;;  %s2434_s17 = inlined_call_operand.vmem [shape: f32[1,32], index: 17, kind: input, shape index: {}]   ;;  %s2435_s18 = inlined_call_operand.hbm [shape: f32[16,32], index: 18, kind: output, shape index: {}]  }
   0x1   :  { %2449 = sst [smem:[#allocation20_spill]] %s2417_s0 }
   0x2   :  { %2450 = sst [smem:[#allocation21_spill]] %s2418_s1 }
   0x3   :  { %2451 = sst [smem:[#allocation22_spill]] %s2419_s2 }
   0x4   :  { %2452 = sst [smem:[#allocation23_spill]] %s2427_s10 }
   0x5   :  { %2453 = sst [smem:[#allocation24_spill]] %s2428_s11 }
   0x6   :  { %2454 = sst [smem:[#allocation25_spill]] %s2429_s12 }
   0x7   :  { %2455 = sst [smem:[#allocation26_spill]] %s2430_s13 }
   0x8   :  { %2456 = sst [smem:[#allocation27_spill]] %s2431_s14 }
   0x9   :  { %2457 = sst [smem:[#allocation28_spill]] %s2432_s15 }
   0xa   :  { %2458 = sst [smem:[#allocation29_spill]] %s2433_s16 }
   0xb   :  { %2459 = sst [smem:[#allocation30_spill]] %s2434_s17 }
   0xc   :  { %2460 = sst [smem:[#allocation31_spill]] %s2435_s18 }
   0xd   :  { %23 = vsyncpa [#allocation3], 0 }
   0xe   :  { %25 = vsyncpa [#allocation3 + $0x1], 0 }
   0xf   :  { %26 = vsyncpa [#allocation6], 0 }
  0x10   :  { %28 = vsyncpa [#allocation6 + $0x1], 0 }
  0x11   :  { %29 = vsyncpa [#allocation4], 0 }
  0x12   :  { %31 = vsyncpa [#allocation4 + $0x1], 0  ;;  %s2080_s27 = smov 0   ;;  %s2082_s28 = smov 0  }
  0x13   :  { %s2084_s29 = smov 0   ;;  %s2086_s30 = smov 0  }
  0x14 LB: > { %2461 = sst [smem:[#allocation13_spill]] %s1958_s27  ;;  %s2104_s20 = sadd.s32 4294967295, %s1970_s30   ;;  %s1970_s30 = sphi %s2086_s30, %s2492_s30   ;;  %s1966_s29 = sphi %s2084_s29, %s2494_s29   ;;  %s1962_s28 = sphi %s2082_s28, %s2496_s28   ;;  %s1958_s27 = sphi %s2080_s27, %s2495_s27  }
  0x15   : > { %2462 = sst [smem:[#allocation14_spill]] %s1966_s29  ;;  %p1584_p0 = scmp.ge.s32.totalorder %s1970_s30, 1 }
  0x16   : > { %2463 = sst [smem:[#allocation15_spill]] %s1970_s30  ;;  %p58_p1 = scmp.eq.s32.totalorder %s2104_s20, 0 }
  0x17   : > { %s2464_s12 = sld [smem:[#allocation25_spill]]  ;;  %p456_p2 = scmp.lt.s32.totalorder %s1970_s30, 3 }
  0x18   : > { %s1972_s22 = smov [#allocation7]   ;;  %s1973_s23 = smov 64  }
  0x19   : > { %p2109_p3 = pnand %p1584_p0, %p456_p2  ;;  %s499_s2 = sshll.u32 %s1972_s22, 4  ;;  %s500_s2 = int_to_ptr.vmem [resolvable:$true] %s499_s2 }
  0x1a   : > { %s1974_s24 = smov 4   ;;  %s1583_s25 = sadd.s32 4294967294, %s1970_s30  }
  0x1b   : > { %p1691_p4 = pneg %p2109_p3  ;;  %s2120_s26 = sadd.s32 1, %s1970_s30  }
  0x1c   : > { %2466 = sst [smem:[#allocation16_spill]] %s2120_s26  ;;  %s44_s0 = sadd.s32 1, %s1966_s29 }
  0x1d   : > { %s497_s1 = sshll.u32 %s2464_s12, 4  ;;  %p1692_p6 = pnand %p1691_p4, %p58_p1  ;;  %s498_s1 = int_to_ptr.hbm [resolvable:$true] %s497_s1 }
  0x1e   : > { %s41_s19 = ssub.s32 %s1970_s30, %s2120_s26  ;;  %p51_p7 = scmp.ne.s32.totalorder %s1966_s29, %s1962_s28 }
  0x1f   : > { %1694 = dma.hbm_to_vmem [thread:$0]  (!%p1692_p6), %s498_s1, 256, %s500_s2, [#allocation6], %s1973_s23, %s1973_s23, %s1974_s24  }
  0x20   : > { %p42_p8 = scmp.eq.s32.totalorder %s41_s19, 0  ;;  %p52_p9 = scmp.eq.s32.totalorder %s1970_s30, 0 }
  0x21   : > { %p57_p10 = scmp.ne.s32.totalorder %s1962_s28, %s1958_s27  ;;  %p443_p11 = scmp.eq.s32.totalorder %s2104_s20, 1 }
  0x22   : > { %s2132_s22 = scalar_select %p42_p8, %s1966_s29, %s44_s0  }
  0x23   : > { %p2134_p12 = por %p52_p9, %p51_p7  ;;  %p2140_p13 = por %p58_p1, %p57_p10 }
  0x24   : > { %2467 = sst [smem:[#allocation17_spill]] %s2132_s22  ;;  %p2144_p0 = por %p443_p11, %p51_p7 }
  0x25   : > { %p449_p2 = scmp.eq.s32.totalorder %s1583_s25, 1  ;;  %p1707_p4 = scmp.lt.s32.totalorder %s1970_s30, 2 }
  0x26   : > { %s2470_s2 = scalar_select %p2144_p0, 1, 0 }
  0x27   : > { %s528_s23 = sand.u32 1, %s1966_s29   ;;  %p2150_p6 = por %p449_p2, %p57_p10 }
  0x28   : > { %2471 = sst [smem:[#allocation18_spill]] %s2470_s2  ;;  %s1587_s0 = sshll.u32 %s528_s23, 2 }
  0x29   : > { %s2472_s24 = scalar_select %p2150_p6, 1, 0 }
  0x2a   : > { %s1588_s19 = sshll.u32 %s1970_s30, 2  ;;  %s2474_s27 = sld [smem:[#allocation20_spill]] }
  0x2b   : > { %2473 = sst [smem:[#allocation19_spill]] %s2472_s24  ;;  %s532_s15 = scalar_lea.vmem [#allocation2], %s1587_s0 }
  0x2c   : > { %s540_s13 = sshll.u32 %s532_s15, 4  ;;  %p2160_p7 = pnand %p1707_p4, %p2134_p12  ;;  %s541_s13 = int_to_ptr.vmem [resolvable:$true] %s540_s13 }
  0x2d   : > { %s2477_s11 = sld [smem:[#allocation21_spill]]  ;;  %s547_s10 = sand.u32 1, %s1970_s30  }
  0x2e   : > { %s529_s14 = scalar_lea.sflag [#allocation3], %s528_s23  ;;  %p1840_p9 = pneg %p2160_p7 }
  0x30   : > { %s2475_s17 = smov %s2474_s27  ;;  %s536_s18 = scalar_lea.hbm %s2474_s27, %s1588_s19 }
  0x31   : > { %s538_s16 = sshll.u32 %s536_s18, 4  ;;  %s1843_s27 = scalar_lea.hbm %s2475_s17, 8  ;;  %s539_s16 = int_to_ptr.hbm [resolvable:$true] %s538_s16 }
  0x32   : > { %s1836_s26 = sshra.s32 %s539_s16, 4  ;;  %s1837_s26 = int_to_ptr.hbm [resolvable:$true] %s1836_s26 }
  0x33   : > { %s555_s24 = scalar_lea.hbm %s2477_s11, %s1588_s19  ;;  %s1838_s18 = scalar_lea.hbm %s1837_s26, 4 }
  0x34   : > { %p1839_p8 = scmp.ne.s32.totalorder %s1837_s26, %s1838_s18  ;;  %p1844_p12 = scmp.lt.s32.totalorder %s1837_s26, %s2475_s17 }
  0x35   : > { %p1845_p2 = scmp.lt.s32.totalorder %s1843_s27, %s1838_s18 }
  0x36   : > { %p1841_p10 = pnand %p1840_p9, %p1839_p8 }
  0x37   : > { %p1846_p4 = por %p1845_p2, %p1844_p12 }
  0x38   : > { %p1842_p11 = pneg %p1841_p10 }
  0x3a   : > { %p1847_p5 = pnand %p1846_p4, %p1842_p11 }
  0x3c   : > { %1850 = shalt.err (!%p1847_p5)
}
  0x3d   : > { %1698 = dma.hbm_to_vmem [thread:$0]  (!%p2160_p7), %s539_s16, 64, %s541_s13, %s529_s14  }
  0x3e   : > { %s557_s2 = sshll.u32 %s555_s24, 4  ;;  %s551_s23 = scalar_lea.vmem [#allocation5], %s1587_s0  ;;  %s558_s2 = int_to_ptr.hbm [resolvable:$true] %s557_s2 }
  0x3f   : > { %s559_s19 = sshll.u32 %s551_s23, 4  ;;  %s548_s30 = scalar_lea.sflag [#allocation6], %s547_s10  ;;  %s560_s19 = int_to_ptr.vmem [resolvable:$true] %s559_s19 }
  0x40   : > { %s1866_s12 = sshra.s32 %s558_s2, 4  ;;  %s1873_s27 = scalar_lea.hbm %s2477_s11, 8  ;;  %s1867_s12 = int_to_ptr.hbm [resolvable:$true] %s1866_s12 }
  0x41   : > { %s1868_s15 = scalar_lea.hbm %s1867_s12, 4  ;;  %p1874_p5 = scmp.lt.s32.totalorder %s1867_s12, %s2477_s11 }
  0x42   : > { %p1869_p8 = scmp.ne.s32.totalorder %s1867_s12, %s1868_s15  ;;  %p1875_p11 = scmp.lt.s32.totalorder %s1873_s27, %s1868_s15 }
  0x44   : > { %p1871_p10 = pnand %p1869_p8, %p1840_p9  ;;  %p1876_p2 = por %p1875_p11, %p1874_p5 }
  0x46   : > { %p1872_p12 = pneg %p1871_p10 }
  0x48   : > { %p1877_p4 = pnand %p1876_p2, %p1872_p12 }
  0x4a   : > { %1880 = shalt.err (!%p1877_p4)
}
  0x4b   : > { %1701 = dma.hbm_to_vmem [thread:$0]  (!%p2160_p7), %s558_s2, 64, %s560_s19, %s548_s30  }
  0x4c   : > { %568 = sbr.rel (%p2109_p3) target bundleno = 2850 (0xb22), region = 92  ;;  %s2195_s10 = sand.u32 (!%p2109_p3), 1, %s1962_s28  }
  0x4d   : > { %s1592_s14 = sshll.u32 (!%p2109_p3), %s2195_s10, 2  ;;  %s571_s16 = scalar_lea.sflag (!%p2109_p3), [#allocation3], %s2195_s10 }
  0x4e   : > { %s574_s24 = scalar_lea.vmem (!%p2109_p3), [#allocation2], %s1592_s14 }
  0x51   : > { %1941 = dma.done.wait (%p2140_p13), %s571_s16, 64  }
  0x52   : > { %1943 = vsyncadd (%p2140_p13), %s571_s16, 4294967232  ;;  %s580_s30 = sand.u32 1, %s2104_s20   ;;  %s2204_s21 = scalar_lea.vmem [#allocation5], %s1592_s14 }
  0x53   : > { %s581_s0 = scalar_lea.sflag [#allocation6], %s580_s30 }
  0x54   : > { %1945 = dma.done.wait (%p2140_p13), %s581_s0, 64  }
  0x55   : > { %1947 = vsyncadd (%p2140_p13), %s581_s0, 4294967232 }
  0x56   : > { %1949 = dma.done.wait (%p58_p1), [#allocation6], 256  }
  0x57   : > { %1951 = vsyncadd (%p58_p1), [#allocation6], 4294967040  ;;  %s2478_s2 = sld [smem:[#allocation22_spill]]  ;;  %v2220_v2 = vld [vmem:[%s574_s24] sm:$0xf]  ;;  %vm678_vm0 = vcmask 261120   ;;  %v651_v29 = vlaneseq }
  0x58   : > { %v1755_v3 = vld [vmem:[%s2420_s3] ss:$0 sm:$0xff]  ;;  %s1975_s15 = smov 104   ;;  %s1976_s26 = smov 120   ;;  %vm707_vm1 = vcmask 64512   ;;  %v1979_v32 = vmov 0.0  }
  0x59   : > { %s1977_s18 = smov 112   ;;  %s1978_s27 = smov 96   ;;  %v652_v30 = vshrl.u32 %v651_v29, 7  ;;  %v654_v31 = vand.u32 127, %v651_v29  ;;  %vm841_vm3 = vcmask 1043456   ;;  %vm942_vm4 = vcmask 130048  }
  0x5a   : > { %s1980_s29 = smov 64   ;;  %s1981_s13 = smov 24   ;;  %vm944_vm5 = vcmask 195584   ;;  %vm1414_vm13 = vcmask 523264  }
  0x5b   : > { %vm655_vm2 = vcmp.gt.s32.totalorder %v654_v31, %v652_v30  ;;  %s1982_s14 = smov 8   ;;  %s1983_s16 = smov 16  }
  0x5c   : > { %v656_v33 = vsel %vm655_vm2, -1e+30, %v1979_v32  ;;  %s2480_s23 = sld [smem:[#allocation23_spill]] }
  0x5d   : > { %v1670_v0 = vld [vmem:[%s2478_s2 + $0x8] sm:$0xff]  ;;  %v1669_v1 = vld [vmem:[%s2478_s2] sm:$0xff]  ;;  %s2482_s22 = sld [smem:[#allocation26_spill]] }
  0x5e   : > { %688 = vmatpush.bf16.msra.mxu0 %v1670_v0  ;;  %s2484_s19 = sld [smem:[#allocation29_spill]] }
  0x5f   : > { %s2485_s12 = sld [smem:[#allocation31_spill]] }
  0x60   : > { %s2487_s25 = sld [smem:[#allocation30_spill]] }
  0x62   : > { %689 = vmatpush.bf16.msra.mxu0 %v1669_v1 }
  0x65   : > { %1604 = vmatmul.msk.bf16.vlgmr.msra.gmra.mxu0 %vm678_vm0, %v2220_v2 }
  0xe2   : > { %v691_v4 = vpop.f32.mrf.mxu0 }
  0xe3   : > { %v692_v5 = vadd.f32 %v1755_v3, %v691_v4 }
  0xe5   : > { %v695_v6 = vpack.c.bf16 %v692_v5, %v692_v5 }
  0xe7   : > { %701 = vrot.lane.b32.xlu1 %v695_v6, %s1975_s15  ;;  %697 = vrot.lane.b32.xlu0 %v695_v6, %s1976_s26  ;;  %v703_v8 = vunpack.c.l.b16 %v695_v6 }
  0xe9   : > { %v704_v9 = vpack.c.b16 %v703_v8, %v703_v8 }
  0xea   : > { %v693_v7 = vpop.f32.mrf.mxu0 }
  0xef   : > { %699 = vrot.lane.b32.xlu0 %v695_v6, %s1977_s18 }
  0xf7   : > { %705 = vrot.lane.b32.xlu0 %v704_v9, %s1978_s27 }
 0x159   : > { %v698_v10 = vpop.permute.xlu0 %697  ;;  %v702_v16 = vpop.permute.xlu1 %701 }
 0x15a   : > { %v727_v11 = vunpack.c.l.b16 %v698_v10  ;;  %v773_v17 = vunpack.c.l.b16 %v702_v16 }
 0x15c   : > { %v728_v12 = vpack.c.b16 %v727_v11, %v727_v11  ;;  %v774_v20 = vpack.c.b16 %v773_v17, %v773_v17 }
 0x15e   : > { %729 = vrot.lane.b32.xlu1 %v728_v12, %s1978_s27 }
 0x161   : > { %v700_v13 = vpop.permute.xlu0 %699 }
 0x162   : > { %v750_v14 = vunpack.c.l.b16 %v700_v13 }
 0x164   : > { %v751_v15 = vpack.c.b16 %v750_v14, %v750_v14 }
 0x166   : > { %752 = vrot.lane.b32.xlu2 %v751_v15, %s1978_s27 }
 0x169   : > { %v706_v18 = vpop.permute.xlu0 %705 }
 0x16a   : > { %v712_v19 = vsel %vm707_vm1, %v706_v18, 0 }
 0x16b   : > { %721 = vmatpush.bf16.xpose.msra.mxu1 %v712_v19 }
 0x16e   : > { %775 = vrot.lane.b32.xlu2 %v774_v20, %s1978_s27 }
 0x172   : > { %1605 = vmatmul.msk.bf16.vlgmr.msra.gmra.mxu1 %vm707_vm1, %v695_v6 }
 0x1c0   : > { %v753_v21 = vpop.permute.xlu2 %752 }
 0x1c1   : > { %v758_v22 = vsel %vm707_vm1, %v753_v21, 0 }
 0x1c2   : > { %767 = vmatpush.bf16.xpose.msra.mxu3 %v758_v22 }
 0x1c8   : > { %v776_v23 = vpop.permute.xlu2 %775 }
 0x1c9   : > { %1607 = vmatmul.msk.bf16.vlgmr.msra.gmra.mxu3 %vm707_vm1, %v700_v13  ;;  %v781_v24 = vsel %vm707_vm1, %v776_v23, 0 }
 0x1ca   : > { %790 = vmatpush.bf16.xpose.msrb.mxu0 %v781_v24 }
 0x1d0   : > { %v730_v25 = vpop.permute.xlu1 %729 }
 0x1d1   : > { %1608 = vmatmul.msk.bf16.vlgmr.msrb.gmra.mxu0 %vm707_vm1, %v702_v16  ;;  %v735_v26 = vsel %vm707_vm1, %v730_v25, 0 }
 0x1d2   : > { %744 = vmatpush.bf16.xpose.msra.mxu2 %v735_v26 }
 0x1d9   : > { %1606 = vmatmul.msk.bf16.vlgmr.msra.gmra.mxu2 %vm707_vm1, %v698_v10 }
 0x1ef   : > { %v723_v27 = vpop.f32.mrf.mxu1 }
 0x1f0   : > { %v724_v46 = vadd.f32 %v723_v27, %v656_v33 }
 0x1f2   : > { %v796_v47 = vsel %vm707_vm1, %v724_v46, -inf }
 0x1f7   : > { %v725_v28 = vpop.f32.mrf.mxu1 }
 0x24c   : > { %v769_v34 = vpop.f32.mrf.mxu3 }
 0x24d   : > { %v770_v35 = vadd.f32 %v769_v34, %v656_v33 }
 0x24e   : > { %v792_v36 = vpop.f32.mrf.mxu0 }
 0x24f   : > { %v793_v37 = vadd.f32 %v792_v36, %v656_v33  ;;  %v802_v38 = vsel %vm707_vm1, %v770_v35, -inf }
 0x250   : > { %803 = vmax.xlane.f32.xlu2 %v802_v38  ;;  %v657_v38 = vunpack.c.l.bf16 %v2220_v2  ;;  %v1673_v2 = vld [vmem:[%s2425_s8] sm:$0xff] }
 0x251   : > { %v805_v39 = vsel %vm707_vm1, %v793_v37, -inf }
 0x252   : > { %806 = vmax.xlane.f32.xlu0 %v805_v39 }
 0x254   : > { %v771_v40 = vpop.f32.mrf.mxu3 }
 0x256   : > { %v794_v41 = vpop.f32.mrf.mxu0 }
 0x25c   : > { %v746_v42 = vpop.f32.mrf.mxu2 }
 0x25d   : > { %v747_v43 = vadd.f32 %v746_v42, %v656_v33 }
 0x25f   : > { %v799_v44 = vsel %vm707_vm1, %v747_v43, -inf }
 0x260   : > { %800 = vmax.xlane.f32.xlu1 %v799_v44 }
 0x264   : > { %v748_v45 = vpop.f32.mrf.mxu2 }
 0x266   : > { %900 = vrot.lane.b32.xlu0 %v774_v20, %s1980_s29 }
 0x268   : > { %858 = vrot.lane.b32.xlu2 %v728_v12, %s1980_s29 }
 0x279   : > { %879 = vrot.lane.b32.xlu1 %v751_v15, %s1980_s29 }
 0x281   : > { %836 = vrot.lane.b32.xlu1 %v704_v9, %s1980_s29 }
 0x291   : > { %797 = vmax.xlane.f32.xlu2 %v796_v47  ;;  %v1674_v47 = vld [vmem:[%s2425_s8 + $0x8] sm:$0xff] }
 0x2c3   : > { %v804_v48 = vpop.xlane.xlu2 %803 }
 0x2c4   : > { %v810_v49 = vsub.f32 %v770_v35, %v804_v48 }
 0x2c5   : > { %v807_v50 = vpop.xlane.xlu0 %806 }
 0x2c6   : > { %v816_v51 = vmul.f32 1.442695, %v810_v49  ;;  %v811_v52 = vsub.f32 %v793_v37, %v807_v50 }
 0x2c8   : > { %1766 = vpow2.f32 %v816_v51  ;;  %v818_v53 = vmul.f32 1.442695, %v811_v52 }
 0x2ca   : > { %1768 = vpow2.f32 %v818_v53 }
 0x2cb   : > { %v859_v54 = vpop.permute.xlu2 %858 }
 0x2cc   : > { %v864_v55 = vsel %vm841_vm3, %v859_v54, 0 }
 0x2cd   : > { %873 = vmatpush.bf16.msrb.mxu2 %v864_v55 }
 0x2ce   : > { %v1767_v56 = vpop.eup %1766 }
 0x2cf   : > { %v826_v57 = vsel %vm707_vm1, %v1767_v56, 0.0  ;;  %v834_v8 = vpack.c.bf16 %v1767_v56, %v1767_v56 }
 0x2d0   : > { %v1769_v58 = vpop.eup %1768  ;;  %827 = vadd.xlane.f32.xlu1 %v826_v57 }
 0x2d1   : > { %v829_v59 = vsel %vm707_vm1, %v1769_v58, 0.0  ;;  %v835_v1 = vpack.c.bf16 %v1769_v58, %v1769_v58  ;;  %1052 = vmatpush.bf16.msra.mxu2 %v1674_v47 }
 0x2d2   : > { %830 = vadd.xlane.f32.xlu2 %v829_v59  ;;  %v650_v59 = vld [vmem:[%s2204_s21] sm:$0xf]  ;;  %s2481_s21 = sld [smem:[#allocation24_spill]] }
 0x2d3   : > { %v801_v60 = vpop.xlane.xlu1 %800 }
 0x2d4   : > { %v809_v61 = vsub.f32 %v747_v43, %v801_v60  ;;  %v1672_v60 = vld [vmem:[%s2423_s6 + $0x8] sm:$0xff] }
 0x2d5   : > { %1053 = vmatpush.bf16.msra.mxu2 %v1673_v2 }
 0x2d6   : > { %v814_v62 = vmul.f32 1.442695, %v809_v61  ;;  %v1671_v61 = vld [vmem:[%s2423_s6] sm:$0xff] }
 0x2d8   : > { %1770 = vpow2.f32 %v814_v62  ;;  %v901_v63 = vpop.permute.xlu0 %900 }
 0x2d9   : > { %v906_v0 = vsel %vm841_vm3, %v901_v63, 0 }
 0x2da   : > { %915 = vmatpush.bf16.msra.mxu0 %v906_v0 }
 0x2dd   : > { %1612 = vmatmul.msk.bf16.vlgmr.msra.gmra.mxu0 %vm707_vm1, %v835_v1 }
 0x2de   : > { %v1771_v3 = vpop.eup %1770 }
 0x2df   : > { %v823_v4 = vsel %vm707_vm1, %v1771_v3, 0.0  ;;  %v833_v5 = vpack.c.bf16 %v1771_v3, %v1771_v3 }
 0x2e0   : > { %824 = vadd.xlane.f32.xlu0 %v823_v4 }
 0x2e1   : > { %1610 = vmatmul.msk.bf16.vlgmr.msrb.gmra.mxu2 %vm707_vm1, %v833_v5 }
 0x2eb   : > { %v880_v6 = vpop.permute.xlu1 %879 }
 0x2ec   : > { %v885_v7 = vsel %vm841_vm3, %v880_v6, 0 }
 0x2ed   : > { %894 = vmatpush.bf16.msrb.mxu3 %v885_v7 }
 0x2f0   : > { %1611 = vmatmul.msk.bf16.vlgmr.msrb.gmra.mxu3 %vm707_vm1, %v834_v8  ;;  %v1756_v8 = vld [vmem:[%s2421_s4] ss:$0 sm:$0xff] }
 0x2f1   : > { %1630 = vmatmul.msk.bf16.vlgmr.msra.gmra.mxu2 %vm678_vm0, %v650_v59 }
 0x2f3   : > { %v837_v9 = vpop.permute.xlu1 %836 }
 0x2f4   : > { %v843_v10 = vsel %vm841_vm3, %v837_v9, 0 }
 0x2f5   : > { %852 = vmatpush.bf16.msrb.mxu1 %v843_v10  ;;  %v1757_v10 = vld [vmem:[%s2422_s5] ss:$0 sm:$0xff] }
 0x2f9   : > { %1016 = vmatpush.bf16.msra.mxu1 %v1672_v60 }
 0x2fd   : > { %1017 = vmatpush.bf16.msra.mxu1 %v1671_v61 }
 0x304   : > { %v798_v11 = vpop.xlane.xlu2 %797 }
 0x305   : > { %v808_v12 = vsub.f32 %v724_v46, %v798_v11  ;;  %v1984_v46 = vmov 32.0  }
 0x307   : > { %v812_v13 = vmul.f32 1.442695, %v808_v12 }
 0x309   : > { %1772 = vpow2.f32 %v812_v13 }
 0x30f   : > { %v1773_v14 = vpop.eup %1772 }
 0x310   : > { %v820_v15 = vsel %vm707_vm1, %v1773_v14, 0.0  ;;  %v832_v16 = vpack.c.bf16 %v1773_v14, %v1773_v14 }
 0x311   : > { %821 = vadd.xlane.f32.xlu0 %v820_v15  ;;  %v1758_v15 = vld [vmem:[%s2426_s9] ss:$0 sm:$0xff] }
 0x312   : > { %1609 = vmatmul.msk.bf16.vlgmr.msrb.gmra.mxu1 %vm707_vm1, %v832_v16 }
 0x343   : > { %v828_v26 = vpop.xlane.xlu1 %827 }
 0x345   : > { %v831_v17 = vpop.xlane.xlu2 %830 }
 0x346   : > { %1774 = vrcp.f32 %v831_v17 }
 0x34c   : > { %v1775_v18 = vpop.eup %1774 }
 0x353   : > { %v825_v20 = vpop.xlane.xlu0 %824 }
 0x354   : > { %1776 = vrcp.f32 %v825_v20 }
 0x355   : > { %1778 = vrcp.f32 %v828_v26 }
 0x35a   : > { %v917_v19 = vpop.f32.mrf.mxu0  ;;  %v1777_v23 = vpop.eup %1776 }
 0x35b   : > { %v928_v21 = vmul.f32 %v1775_v18, %v917_v19  ;;  %v1779_v28 = vpop.eup %1778 }
 0x35d   : > { %938 = vrot.lane.b32.xlu0 %v928_v21, %s1981_s13  ;;  %v1759_v21 = vld [vmem:[%s2424_s7] ss:$0 sm:$0xff] }
 0x362   : > { %v919_v22 = vpop.f32.mrf.mxu0 }
 0x364   : > { %v875_v24 = vpop.f32.mrf.mxu2 }
 0x365   : > { %v926_v25 = vmul.f32 %v1777_v23, %v875_v24 }
 0x367   : > { %930 = vrot.lane.b32.xlu2 %v926_v25, %s1982_s14 }
 0x36c   : > { %v877_v27 = vpop.f32.mrf.mxu2 }
 0x373   : > { %v896_v29 = vpop.f32.mrf.mxu3 }
 0x374   : > { %v927_v30 = vmul.f32 %v1779_v28, %v896_v29  ;;  %v1055_v16 = vpop.f32.mrf.mxu2 }
 0x375   : > { %v1056_v17 = vadd.f32 %v1758_v15, %v1055_v16 }
 0x376   : > { %934 = vrot.lane.b32.xlu1 %v927_v30, %s1983_s16 }
 0x377   : > { %v1067_v18 = vpack.c.bf16 %v1056_v17, %v1056_v17 }
 0x379   : > { %v1079_v19 = vsel %vm707_vm1, %v1067_v18, 0 }
 0x37a   : > { %1088 = vmatpush.bf16.xpose.msra.mxu3 %v1079_v19 }
 0x37b   : > { %v898_v31 = vpop.f32.mrf.mxu3 }
 0x37c   : > { %v1057_v20 = vpop.f32.mrf.mxu2 }
 0x37e   : > { %1073 = vrot.lane.b32.xlu1 %v1067_v18, %s1975_s15 }
 0x384   : > { %v822_v34 = vpop.xlane.xlu0 %821 }
 0x385   : > { %1780 = vrcp.f32 %v822_v34 }
 0x386   : > { %1782 = vrcp.f32 %v1984_v46  ;;  %1069 = vrot.lane.b32.xlu1 %v1067_v18, %s1976_s26 }
 0x38b   : > { %v1781_v35 = vpop.eup %1780 }
 0x38c   : > { %v1783_v48 = vpop.eup %1782 }
 0x38d   : > { %v953_v49 = vmul.f32 32.0, %v1783_v48  ;;  %vm957_vm6 = vweird.f32 %v1783_v48 }
 0x38f   : > { %v854_v32 = vpop.f32.mrf.mxu1  ;;  %v954_v50 = vsub.f32 1.0, %v953_v49 }
 0x390   : > { %v925_v37 = vmul.f32 %v1781_v35, %v854_v32 }
 0x391   : > { %v955_v51 = vmul.f32 %v1783_v48, %v954_v50 }
 0x393   : > { %v956_v52 = vadd.f32 %v1783_v48, %v955_v51 }
 0x395   : > { %v2272_v53 = vsel %vm957_vm6, %v1783_v48, %v956_v52 }
 0x397   : > { %v856_v33 = vpop.f32.mrf.mxu1 }
 0x3c1   : > { %v931_v36 = vpop.permute.xlu2 %930 }
 0x3c2   : > { %v941_v39 = vsel %vm707_vm1, %v925_v37, %v931_v36  ;;  %v1191_v37 = vunpack.c.l.b16 %v1067_v18 }
 0x3cf   : > { %v939_v41 = vpop.permute.xlu0 %938 }
 0x3e8   : > { %v935_v40 = vpop.permute.xlu1 %934 }
 0x3e9   : > { %v943_v42 = vsel %vm942_vm4, %v941_v39, %v935_v40 }
 0x3ea   : > { %v945_v43 = vsel %vm944_vm5, %v943_v42, %v939_v41  ;;  %v1192_v41 = vpack.c.b16 %v1191_v37, %v1191_v37 }
 0x3eb   : > { %v946_v44 = vadd.f32 %v945_v43, %v657_v38 }
 0x3ed   : > { %v949_v45 = vsel %vm678_vm0, %v946_v44, 0.0 }
 0x3ee   : > { %950 = vadd.xlane.f32.xlu2 %v949_v45 }
 0x3f0   : > { %v1074_v26 = vpop.permute.xlu1 %1073 }
 0x3f1   : > { %v1136_v27 = vsel %vm707_vm1, %v1074_v26, 0 }
 0x3f2   : > { %1145 = vmatpush.bf16.xpose.msrb.mxu2 %v1136_v27 }
 0x3f8   : > { %v1070_v28 = vpop.permute.xlu1 %1069 }
 0x3f9   : > { %v1098_v29 = vsel %vm707_vm1, %v1070_v28, 0  ;;  %v1214_v30 = vunpack.c.l.b16 %v1070_v28 }
 0x3fa   : > { %1107 = vmatpush.bf16.xpose.msrb.mxu0 %v1098_v29 }
 0x3fb   : > { %v1215_v31 = vpack.c.b16 %v1214_v30, %v1214_v30 }
 0x461   : > { %v951_v54 = vpop.xlane.xlu2 %950 }
 0x462   : > { %v959_v55 = vmul.f32 %v2272_v53, %v951_v54 }
 0x464   : > { %v960_v56 = vsub.f32 %v946_v44, %v959_v55 }
 0x466   : > { %v961_v57 = vmul.f32 %v960_v56, %v960_v56 }
 0x468   : > { %v962_v58 = vsel %vm678_vm0, %v961_v57, 0.0 }
 0x469   : > { %963 = vadd.xlane.f32.xlu0 %v962_v58  ;;  %v1260_v58 = vunpack.c.l.b16 %v1074_v26 }
 0x46b   : > { %v1261_v59 = vpack.c.b16 %v1260_v58, %v1260_v58  ;;  %v1676_v58 = vld [vmem:[#allocation7 + $0x8] sm:$0xff] }
 0x4dc   : > { %v964_v62 = vpop.xlane.xlu0 %963 }
 0x4dd   : > { %v965_v63 = vmul.f32 %v964_v62, %v2272_v53 }
 0x4df   : > { %v966_v0 = vadd.f32 1e-05, %v965_v63 }
 0x4e1   : > { %1784 = vrsqrt.f32 %v966_v0  ;;  %vm973_vm8 = vweird.f32 %v966_v0 }
 0x4e7   : > { %v1785_v1 = vpop.eup %1784 }
 0x4e8   : > { %v968_v3 = vmul.f32 %v1785_v1, %v966_v0  ;;  %vm974_vm7 = vweird.f32 %v1785_v1 }
 0x4e9   : > { %vm975_vm9 = vmor %vm973_vm8, %vm974_vm7 }
 0x4ea   : > { %v969_v4 = vmul.f32 %v1785_v1, %v968_v3 }
 0x4ec   : > { %v970_v5 = vmul.f32 0.5, %v969_v4 }
 0x4ee   : > { %v971_v6 = vsub.f32 1.5, %v970_v5 }
 0x4f0   : > { %v972_v7 = vmul.f32 %v1785_v1, %v971_v6 }
 0x4f2   : > { %v976_v9 = vsel %vm975_vm9, %v1785_v1, %v972_v7 }
 0x4f3   : > { %v977_v11 = vmul.f32 %v976_v9, %v960_v56 }
 0x4f5   : > { %v981_v12 = vmul.f32 %v1756_v8, %v977_v11 }
 0x4f7   : > { %v2291_v13 = vadd.f32 %v1757_v10, %v981_v12 }
 0x4f9   : > { %v986_v14 = vpack.c.bf16 %v2291_v13, %v2291_v13 }
 0x4fb   : > { %1621 = vmatmul.msk.bf16.vlgmr.msra.gmra.mxu1 %vm678_vm0, %v986_v14 }
 0x578   : > { %v1019_v22 = vpop.f32.mrf.mxu1 }
 0x579   : > { %v1020_v23 = vadd.f32 %v1759_v21, %v1019_v22 }
 0x57b   : > { %v1059_v24 = vpack.c.bf16 %v1020_v23, %v1020_v23 }
 0x57d   : > { %1063 = vrot.lane.b32.xlu2 %v1059_v24, %s1977_s18  ;;  %1065 = vrot.lane.b32.xlu1 %v1059_v24, %s1975_s15 }
 0x57e   : > { %1631 = vmatmul.msk.bf16.vlgmr.msra.gmra.mxu3 %vm707_vm1, %v1059_v24 }
 0x580   : > { %v1021_v25 = vpop.f32.mrf.mxu1 }
 0x585   : > { %1071 = vrot.lane.b32.xlu1 %v1067_v18, %s1977_s18  ;;  %1216 = vrot.lane.b32.xlu2 %v1215_v31, %s1978_s27  ;;  %s2479_s18 = sld [smem:[#allocation27_spill]] }
 0x58d   : > { %1061 = vrot.lane.b32.xlu1 %v1059_v24, %s1976_s26  ;;  %s1466_s26 = scalar_lea.sflag [#allocation4], %s2195_s10 }
 0x5d7   : > { %v1064_v38 = vpop.permute.xlu2 %1063 }
 0x5df   : > { %v1217_v43 = vpop.permute.xlu2 %1216 }
 0x5e0   : > { %v1222_v44 = vsel %vm841_vm3, %v1217_v43, 0 }
 0x5e1   : > { %1231 = vmatpush.bf16.msra.mxu0 %v1222_v44 }
 0x5ef   : > { %v1066_v32 = vpop.permute.xlu1 %1065 }
 0x5f0   : > { %1634 = vmatmul.msk.bf16.vlgmr.msrb.gmra.mxu2 %vm707_vm1, %v1066_v32 }
 0x5f7   : > { %v1072_v33 = vpop.permute.xlu1 %1071 }
 0x5f8   : > { %v1117_v34 = vsel %vm707_vm1, %v1072_v33, 0  ;;  %v1237_v35 = vunpack.c.l.b16 %v1072_v33 }
 0x5f9   : > { %1126 = vmatpush.bf16.xpose.msrb.mxu1 %v1117_v34 }
 0x5fa   : > { %v1238_v36 = vpack.c.b16 %v1237_v35, %v1237_v35 }
 0x5fc   : > { %1239 = vrot.lane.b32.xlu2 %v1238_v36, %s1978_s27 }
 0x5ff   : > { %v1062_v39 = vpop.permute.xlu1 %1061 }
 0x600   : > { %1632 = vmatmul.msk.bf16.vlgmr.msrb.gmra.mxu0 %vm707_vm1, %v1062_v39  ;;  %1633 = vmatmul.msk.bf16.vlgmr.msrb.gmra.mxu1 %vm707_vm1, %v1064_v38 }
 0x601   : > { %v1090_v40 = vpop.f32.mrf.mxu3 }
 0x602   : > { %v1151_v60 = vsel %vm707_vm1, %v1090_v40, -inf }
 0x604   : > { %1193 = vrot.lane.b32.xlu2 %v1192_v41, %s1978_s27 }
 0x609   : > { %v1092_v42 = vpop.f32.mrf.mxu3 }
 0x656   : > { %v1240_v45 = vpop.permute.xlu2 %1239 }
 0x657   : > { %v1245_v46 = vsel %vm841_vm3, %v1240_v45, 0 }
 0x658   : > { %1254 = vmatpush.bf16.msra.mxu1 %v1245_v46 }
 0x65e   : > { %v1194_v47 = vpop.permute.xlu2 %1193 }
 0x65f   : > { %v1199_v2 = vsel %vm841_vm3, %v1194_v47, 0 }
 0x660   : > { %1208 = vmatpush.bf16.msrb.mxu3 %v1199_v2 }
 0x664   : > { %1369 = vmatpush.bf16.msra.mxu3 %v1676_v58 }
 0x673   : > { %v1147_v48 = vpop.f32.mrf.mxu2 }
 0x674   : > { %v1160_v57 = vsel %vm707_vm1, %v1147_v48, -inf }
 0x67b   : > { %v1149_v49 = vpop.f32.mrf.mxu2 }
 0x67d   : > { %v1109_v50 = vpop.f32.mrf.mxu0  ;;  %v1128_v51 = vpop.f32.mrf.mxu1 }
 0x67e   : > { %v1157_v52 = vsel %vm707_vm1, %v1128_v51, -inf  ;;  %v1154_v54 = vsel %vm707_vm1, %v1109_v50, -inf }
 0x67f   : > { %1158 = vmax.xlane.f32.xlu0 %v1157_v52  ;;  %1155 = vmax.xlane.f32.xlu1 %v1154_v54 }
 0x685   : > { %v1111_v55 = vpop.f32.mrf.mxu0  ;;  %v1130_v56 = vpop.f32.mrf.mxu1 }
 0x687   : > { %1161 = vmax.xlane.f32.xlu0 %v1160_v57 }
 0x69b   : > { %1262 = vrot.lane.b32.xlu0 %v1261_v59, %s1978_s27  ;;  %v1675_v59 = vld [vmem:[#allocation7] sm:$0xff]  ;;  %s2483_s27 = sld [smem:[#allocation28_spill]] }
 0x69c   : > { %1370 = vmatpush.bf16.msra.mxu3 %v1675_v59 }
 0x6c5   : > { %1152 = vmax.xlane.f32.xlu0 %v1151_v60  ;;  %v1680_v60 = vld [vmem:[%s2479_s18 + $0x18] sm:$0xff] }
 0x6c6   : > { %1422 = vmatpush.bf16.msrb.mxu0 %v1680_v60 }
 0x6f2   : > { %v1159_v61 = vpop.xlane.xlu0 %1158  ;;  %v1156_v62 = vpop.xlane.xlu1 %1155 }
 0x6f3   : > { %v1165_v63 = vsub.f32 %v1128_v51, %v1159_v61  ;;  %v1164_v0 = vsub.f32 %v1109_v50, %v1156_v62  ;;  %v1679_v62 = vld [vmem:[%s2479_s18 + $0x10] sm:$0xff] }
 0x6f4   : > { %1423 = vmatpush.bf16.msrb.mxu0 %v1679_v62 }
 0x6f5   : > { %v1171_v1 = vmul.f32 1.442695, %v1165_v63  ;;  %v1169_v3 = vmul.f32 1.442695, %v1164_v0 }
 0x6f7   : > { %1786 = vpow2.f32 %v1171_v1 }
 0x6f8   : > { %1788 = vpow2.f32 %v1169_v3 }
 0x6fa   : > { %v1162_v4 = vpop.xlane.xlu0 %1161 }
 0x6fb   : > { %v1166_v5 = vsub.f32 %v1147_v48, %v1162_v4 }
 0x6fd   : > { %v1787_v6 = vpop.eup %1786  ;;  %v1173_v7 = vmul.f32 1.442695, %v1166_v5 }
 0x6fe   : > { %v1789_v8 = vpop.eup %1788  ;;  %v1189_v9 = vpack.c.bf16 %v1787_v6, %v1787_v6  ;;  %v1181_v10 = vsel %vm707_vm1, %v1787_v6, 0.0 }
 0x6ff   : > { %v1188_v11 = vpack.c.bf16 %v1789_v8, %v1789_v8  ;;  %1790 = vpow2.f32 %v1173_v7  ;;  %1182 = vadd.xlane.f32.xlu2 %v1181_v10  ;;  %v1178_v12 = vsel %vm707_vm1, %v1789_v8, 0.0  ;;  %v1760_v7 = vld [vmem:[%s2480_s23] ss:$0 sm:$0xff] }
 0x700   : > { %1179 = vadd.xlane.f32.xlu1 %v1178_v12  ;;  %1637 = vmatmul.msk.bf16.vlgmr.msra.gmra.mxu1 %vm707_vm1, %v1189_v9  ;;  %v1761_v9 = vld [vmem:[%s2481_s21] ss:$0 sm:$0xff] }
 0x701   : > { %1636 = vmatmul.msk.bf16.vlgmr.msra.gmra.mxu0 %vm707_vm1, %v1188_v11 }
 0x705   : > { %v1791_v14 = vpop.eup %1790 }
 0x706   : > { %v1184_v15 = vsel %vm707_vm1, %v1791_v14, 0.0  ;;  %v1190_v18 = vpack.c.bf16 %v1791_v14, %v1791_v14 }
 0x708   : > { %1185 = vadd.xlane.f32.xlu1 %v1184_v15  ;;  %v1678_v15 = vld [vmem:[%s2479_s18 + $0x8] sm:$0xff] }
 0x709   : > { %1424 = vmatpush.bf16.msrb.mxu0 %v1678_v15 }
 0x70d   : > { %v1263_v16 = vpop.permute.xlu0 %1262 }
 0x70e   : > { %v1268_v17 = vsel %vm841_vm3, %v1263_v16, 0  ;;  %v1677_v16 = vld [vmem:[%s2479_s18] sm:$0xff] }
 0x70f   : > { %1277 = vmatpush.bf16.msra.mxu2 %v1268_v17  ;;  %1425 = vmatpush.bf16.msrb.mxu0 %v1677_v16  ;;  %v1762_v17 = vld [vmem:[%s2482_s22] ss:$0 sm:$0xff] }
 0x712   : > { %1638 = vmatmul.msk.bf16.vlgmr.msra.gmra.mxu2 %vm707_vm1, %v1190_v18 }
 0x738   : > { %v1153_v19 = vpop.xlane.xlu0 %1152 }
 0x739   : > { %v1163_v20 = vsub.f32 %v1090_v40, %v1153_v19 }
 0x73b   : > { %v1167_v21 = vmul.f32 1.442695, %v1163_v20 }
 0x73d   : > { %1792 = vpow2.f32 %v1167_v21 }
 0x743   : > { %v1793_v22 = vpop.eup %1792 }
 0x744   : > { %v1187_v23 = vpack.c.bf16 %v1793_v22, %v1793_v22  ;;  %v1175_v24 = vsel %vm707_vm1, %v1793_v22, 0.0 }
 0x745   : > { %1176 = vadd.xlane.f32.xlu1 %v1175_v24 }
 0x746   : > { %1635 = vmatmul.msk.bf16.vlgmr.msrb.gmra.mxu3 %vm707_vm1, %v1187_v23  ;;  %v1763_v23 = vld [vmem:[%s2483_s27] ss:$0 sm:$0xff] }
 0x772   : > { %v1183_v25 = vpop.xlane.xlu2 %1182 }
 0x773   : > { %v1180_v26 = vpop.xlane.xlu1 %1179  ;;  %1794 = vrcp.f32 %v1183_v25 }
 0x774   : > { %1796 = vrcp.f32 %v1180_v26 }
 0x779   : > { %v1795_v27 = vpop.eup %1794 }
 0x77a   : > { %v1797_v29 = vpop.eup %1796 }
 0x77b   : > { %v1186_v35 = vpop.xlane.xlu1 %1185 }
 0x77c   : > { %1798 = vrcp.f32 %v1186_v35 }
 0x77d   : > { %v1256_v28 = vpop.f32.mrf.mxu1 }
 0x77e   : > { %v1233_v30 = vpop.f32.mrf.mxu0  ;;  %v1289_v31 = vmul.f32 %v1795_v27, %v1256_v28 }
 0x77f   : > { %v1288_v32 = vmul.f32 %v1797_v29, %v1233_v30 }
 0x780   : > { %1296 = vrot.lane.b32.xlu0 %v1289_v31, %s1983_s16 }
 0x781   : > { %1292 = vrot.lane.b32.xlu1 %v1288_v32, %s1982_s14  ;;  %s1666_s14 = sshll.u32 %s2104_s20, 3 }
 0x782   : > { %v1799_v36 = vpop.eup %1798  ;;  %s1476_s29 = scalar_lea.hbm %s2485_s12, %s1666_s14 }
 0x783   : > { %s1480_s15 = sshll.u32 %s1476_s29, 4  ;;  %s1481_s15 = int_to_ptr.hbm [resolvable:$true] %s1480_s15 }
 0x784   : > { %s1910_s27 = sshra.s32 %s1481_s15, 4  ;;  %s1911_s27 = int_to_ptr.hbm [resolvable:$true] %s1910_s27 }
 0x785   : > { %v1258_v33 = vpop.f32.mrf.mxu1  ;;  %s1912_s14 = scalar_lea.hbm %s1911_s27, 8  ;;  %p1917_p7 = scmp.lt.s32.totalorder %s1911_s27, %s2485_s12 }
 0x786   : > { %v1235_v34 = vpop.f32.mrf.mxu0  ;;  %p1913_p1 = scmp.ne.s32.totalorder %s1911_s27, %s1912_s14 }
 0x788   : > { %p1914_p3 = pnand %p1913_p1, %p2144_p0 }
 0x78a   : > { %p1915_p13 = pneg %p1914_p3 }
 0x795   : > { %v1279_v37 = vpop.f32.mrf.mxu2 }
 0x796   : > { %v1290_v38 = vmul.f32 %v1799_v36, %v1279_v37 }
 0x798   : > { %1300 = vrot.lane.b32.xlu2 %v1290_v38, %s1981_s13  ;;  %s1595_s13 = sshll.u32 %s2195_s10, 3 }
 0x799   : > { %s647_s20 = scalar_lea.vmem [#allocation8], %s1595_s13  ;;  %s1916_s13 = scalar_lea.hbm %s2485_s12, 16 }
 0x79a   : > { %s1478_s22 = sshll.u32 %s647_s20, 4  ;;  %p1918_p9 = scmp.lt.s32.totalorder %s1916_s13, %s1912_s14  ;;  %s1479_s22 = int_to_ptr.vmem [resolvable:$true] %s1478_s22 }
 0x79c   : > { %p1919_p8 = por %p1918_p9, %p1917_p7 }
 0x79d   : > { %v1281_v39 = vpop.f32.mrf.mxu2 }
 0x79e   : > { %p1920_p10 = pnand %p1919_p8, %p1915_p13 }
 0x7b8   : > { %v1177_v42 = vpop.xlane.xlu1 %1176 }
 0x7b9   : > { %1800 = vrcp.f32 %v1177_v42 }
 0x7bf   : > { %v1801_v43 = vpop.eup %1800 }
 0x7c9   : > { %v1210_v40 = vpop.f32.mrf.mxu3 }
 0x7ca   : > { %v1287_v44 = vmul.f32 %v1801_v43, %v1210_v40  ;;  %v1764_v43 = vld [vmem:[%s2484_s19] ss:$0 sm:$0xff] }
 0x7d1   : > { %v1212_v41 = vpop.f32.mrf.mxu3 }
 0x7f2   : > { %v1297_v45 = vpop.permute.xlu0 %1296  ;;  %v1301_v2 = vpop.permute.xlu2 %1300 }
 0x7f3   : > { %v1293_v46 = vpop.permute.xlu1 %1292 }
 0x7f4   : > { %v1303_v47 = vsel %vm707_vm1, %v1287_v44, %v1293_v46 }
 0x7f5   : > { %v1304_v48 = vsel %vm942_vm4, %v1303_v47, %v1297_v45  ;;  %v1765_v45 = vld [vmem:[%s2487_s25] ss:$0 sm:$0xff] }
 0x7f6   : > { %v1305_v49 = vsel %vm944_vm5, %v1304_v48, %v1301_v2 }
 0x7f7   : > { %v1306_v50 = vadd.f32 %v1305_v49, %v2291_v13 }
 0x7f9   : > { %v1309_v51 = vsel %vm678_vm0, %v1306_v50, 0.0 }
 0x7fa   : > { %1310 = vadd.xlane.f32.xlu1 %v1309_v51 }
 0x86d   : > { %v1311_v52 = vpop.xlane.xlu1 %1310 }
 0x86e   : > { %v1312_v54 = vmul.f32 %v1311_v52, %v2272_v53 }
 0x870   : > { %v1313_v55 = vsub.f32 %v1306_v50, %v1312_v54 }
 0x872   : > { %v1314_v56 = vmul.f32 %v1313_v55, %v1313_v55 }
 0x874   : > { %v1315_v57 = vsel %vm678_vm0, %v1314_v56, 0.0 }
 0x875   : > { %1316 = vadd.xlane.f32.xlu0 %v1315_v57 }
 0x8e8   : > { %v1317_v13 = vpop.xlane.xlu0 %1316 }
 0x8e9   : > { %v1318_v61 = vmul.f32 %v1317_v13, %v2272_v53 }
 0x8eb   : > { %v1319_v63 = vadd.f32 1e-05, %v1318_v61 }
 0x8ed   : > { %1802 = vrsqrt.f32 %v1319_v63  ;;  %vm1326_vm11 = vweird.f32 %v1319_v63 }
 0x8f3   : > { %v1803_v0 = vpop.eup %1802 }
 0x8f4   : > { %v1321_v1 = vmul.f32 %v1803_v0, %v1319_v63  ;;  %vm1327_vm10 = vweird.f32 %v1803_v0 }
 0x8f5   : > { %vm1328_vm12 = vmor %vm1326_vm11, %vm1327_vm10 }
 0x8f6   : > { %v1322_v3 = vmul.f32 %v1803_v0, %v1321_v1 }
 0x8f8   : > { %v1323_v4 = vmul.f32 0.5, %v1322_v3 }
 0x8fa   : > { %v1324_v5 = vsub.f32 1.5, %v1323_v4 }
 0x8fc   : > { %v1325_v6 = vmul.f32 %v1803_v0, %v1324_v5 }
 0x8fe   : > { %v1329_v8 = vsel %vm1328_vm12, %v1803_v0, %v1325_v6 }
 0x8ff   : > { %v1330_v10 = vmul.f32 %v1329_v8, %v1313_v55 }
 0x901   : > { %v1334_v11 = vmul.f32 %v1760_v7, %v1330_v10 }
 0x903   : > { %v1338_v12 = vadd.f32 %v1761_v9, %v1334_v11 }
 0x905   : > { %v1339_v14 = vpack.c.bf16 %v1338_v12, %v1338_v12 }
 0x907   : > { %1647 = vmatmul.msk.bf16.vlgmr.msra.gmra.mxu3 %vm678_vm0, %v1339_v14 }
 0x98a   : > { %v1372_v18 = vpop.f32.mrf.mxu3 }
 0x98b   : > { %v1373_v19 = vadd.f32 %v1762_v17, %v1372_v18 }
 0x98d   : > { %v1376_v20 = vmax.f32 %v1373_v19, 0.0 }
 0x98f   : > { %v1377_v21 = vpack.c.bf16 %v1376_v20, %v1376_v20 }
 0x991   : > { %1664 = vmatmul.msk.bf16.vlgmr.msrb.gmra.mxu0 %vm1414_vm13, %v1377_v21 }
 0x992   : > { %v1374_v22 = vpop.f32.mrf.mxu3 }
 0xa0e   : > { %v1427_v24 = vpop.f32.mrf.mxu0 }
 0xa0f   : > { %v1428_v25 = vadd.f32 %v1763_v23, %v1427_v24 }
 0xa11   : > { %v1431_v26 = vadd.f32 %v1428_v25, %v1338_v12 }
 0xa13   : > { %v1434_v27 = vsel %vm678_vm0, %v1431_v26, 0.0 }
 0xa14   : > { %1435 = vadd.xlane.f32.xlu2 %v1434_v27 }
 0xa16   : > { %v1429_v28 = vpop.f32.mrf.mxu0 }
 0xa87   : > { %v1436_v29 = vpop.xlane.xlu2 %1435 }
 0xa88   : > { %v1437_v30 = vmul.f32 %v1436_v29, %v2272_v53 }
 0xa8a   : > { %v1438_v31 = vsub.f32 %v1431_v26, %v1437_v30 }
 0xa8c   : > { %v1439_v32 = vmul.f32 %v1438_v31, %v1438_v31 }
 0xa8e   : > { %v1440_v33 = vsel %vm678_vm0, %v1439_v32, 0.0 }
 0xa8f   : > { %1441 = vadd.xlane.f32.xlu1 %v1440_v33 }
 0xb02   : > { %v1442_v34 = vpop.xlane.xlu1 %1441 }
 0xb03   : > { %v1443_v35 = vmul.f32 %v1442_v34, %v2272_v53 }
 0xb05   : > { %v1444_v36 = vadd.f32 1e-05, %v1443_v35 }
 0xb07   : > { %1804 = vrsqrt.f32 %v1444_v36  ;;  %vm1451_vm15 = vweird.f32 %v1444_v36 }
 0xb0d   : > { %v1805_v37 = vpop.eup %1804 }
 0xb0e   : > { %v1446_v38 = vmul.f32 %v1805_v37, %v1444_v36  ;;  %vm1452_vm14 = vweird.f32 %v1805_v37 }
 0xb0f   : > { %vm1453_vm1 = vmor %vm1451_vm15, %vm1452_vm14 }
 0xb10   : > { %v1447_v39 = vmul.f32 %v1805_v37, %v1446_v38 }
 0xb12   : > { %v1448_v40 = vmul.f32 0.5, %v1447_v39 }
 0xb14   : > { %v1449_v41 = vsub.f32 1.5, %v1448_v40 }
 0xb16   : > { %v1450_v42 = vmul.f32 %v1805_v37, %v1449_v41 }
 0xb18   : > { %v1454_v53 = vsel %vm1453_vm1, %v1805_v37, %v1450_v42 }
 0xb19   : > { %v1455_v44 = vmul.f32 %v1454_v53, %v1438_v31 }
 0xb1b   : > { %v1459_v46 = vmul.f32 %v1764_v43, %v1455_v44 }
 0xb1d   : > { %v1463_v47 = vadd.f32 %v1765_v45, %v1459_v46 }
 0xb1f   : > { %1464 = vst.msk [vmem:[%s647_s20] sm:$0xff] %vm678_vm0, %v1463_v47 }
 0xb20   : > { %1923 = shalt.err (!%p1920_p10)
}
 0xb21   : > { %1689 = dma.vmem_to_hbm [thread:$0]  (%p2144_p0), %s1479_s22, 128, %s1481_s15, %s1466_s26  }
 0xb22 PF: > { %s2488_s10 = sld [smem:[#allocation13_spill]] }
 0xb23   : > { %s2490_s29 = sld [smem:[#allocation15_spill]] }
 0xb28   : > { %s1492_s30 = sand.u32 1, %s2488_s10  }
 0xb29   : > { %p2491_p12 = scmp.ge.s32.totalorder %s2490_s29, 2  ;;  %s1493_s0 = scalar_lea.sflag [#allocation4], %s1492_s30 }
 0xb2b   : > { %p1703_p5 = pnand %p2491_p12, %p2150_p6 }
 0xb2d   : > { %p1704_p11 = pneg %p1703_p5 }
 0xb2f   : > { %1953 = dma.done.wait (%p1704_p11), %s1493_s0, 128  }
 0xb30   : > { %1955 = vsyncadd (%p1704_p11), %s1493_s0, 4294967168  ;;  %s2492_s30 = sld [smem:[#allocation16_spill]]  ;;  %s2495_s27 = smov %s1962_s28 }
 0xb31   : > { %s2493_s25 = sld [smem:[#allocation14_spill]] }
 0xb32   : > { %s2494_s29 = sld [smem:[#allocation17_spill]] }
 0xb36   : > { %p34_p2 = scmp.ge.s32.totalorder %s2492_s30, 4  }
 0xb37   : > { %s2496_s28 = smov %s2493_s25 }
 0xb38   :  { %36 = sbr.rel (!%p34_p2) target bundleno = 20 (0x14), region = 154 }
 0xb3d   :  { %1499 = vsyncpa [#allocation3], 1 }
 0xb3e   :  { %1501 = vsyncpa [#allocation3 + $0x1], 1 }
 0xb3f   :  { %1502 = vsyncpa [#allocation6], 1 }
 0xb40   :  { %1504 = vsyncpa [#allocation6 + $0x1], 1 }
 0xb41   :  { %1505 = vsyncpa [#allocation4], 1 }
 0xb42   :  { %1507 = vsyncpa [#allocation4 + $0x1], 1 }

</bundles_post_ra>
